<compile_context>
chip_gen: v6e
topology: v6e:2x2x1
jax: 0.10.0
libtpu: 0.0.40
codegen_flags: <defaults>
</compile_context>

<pallas_src>
import math
import numpy as np

import jax
import jax.numpy as jnp
from jax import lax
from jax.experimental import pallas as pl
from jax.experimental.pallas import tpu as pltpu


TARGET_SA_ROWS = 2048      # rows per grid step for the SA / group_all kernels
TARGET_MLP_LANES = 2048    # query points (lanes) per grid step for the implicit MLP
VMEM_LIMIT_BYTES = 48 * 1024 * 1024   # < v7x 64 MiB physical, > 32 MiB default scoped


def _round_up(x, m):
    return ((x + m - 1) // m) * m


def _relu(x):
    return jnp.maximum(x, 0.0)


def _cparams(sems):
    return pltpu.CompilerParams(dimension_semantics=sems,
                                vmem_limit_bytes=VMEM_LIMIT_BYTES)


# ----------------------------------------------------------------------------
# Pallas kernels
# ----------------------------------------------------------------------------
def _make_sa_kernel(n_layers, tile_g, nsample):
    """Fused (conv1x1 w/ folded BN + ReLU) x n_layers + max over nsample."""
    def kernel(x_ref, *refs):
        o_ref = refs[-1]
        p = refs[:-1]
        h = x_ref[...]                                   # (tile_g*K, Cin) bf16
        for li in range(n_layers):
            w = p[2 * li][...]                           # (Ci, Co) bf16 (BN folded)
            b = p[2 * li + 1][...]                       # (1, Co)  f32
            y = jnp.dot(h, w, preferred_element_type=jnp.float32) + b
            h = jnp.maximum(y, 0.0).astype(jnp.bfloat16)
        cout = h.shape[-1]
        # per-group max over the nsample axis (torch.max(..., dim=2))
        o_ref[...] = jnp.max(h.reshape(tile_g, nsample, cout), axis=1)
    return kernel


def sa_mlp_max(x, layers, target_rows=TARGET_SA_ROWS):
    """x: [G, K, Cin] bf16; layers: list of (w_bf16, b_f32). Returns [G, Cout] bf16."""
    G, K, Cin = x.shape
    Cout = layers[-1][0].shape[1]
    tile_g = max(8, (target_rows // max(K, 1)) // 8 * 8)   # multiple of 8 always
    if tile_g >= G:
        Gp = _round_up(G, 8)
        tile_g = Gp
    else:
        Gp = _round_up(G, tile_g)
    if Gp != G:                                # pad whole groups; sliced off below
        x = jnp.pad(x, ((0, Gp - G), (0, 0), (0, 0)))
    xf = x.reshape(Gp * K, Cin)                # flat rows: tile purely on rows

    in_specs = [pl.BlockSpec((tile_g * K, Cin), lambda i: (i, 0))]
    args = [xf]
    for (w, b) in layers:
        in_specs.append(pl.BlockSpec(w.shape, lambda i: (0, 0)))
        in_specs.append(pl.BlockSpec(b.shape, lambda i: (0, 0)))
        args += [w, b]

    out = pl.pallas_call(
        _make_sa_kernel(len(layers), tile_g, K),
        grid=(Gp // tile_g,),
        in_specs=in_specs,
        out_specs=pl.BlockSpec((tile_g, Cout), lambda i: (i, 0)),
        out_shape=jax.ShapeDtypeStruct((Gp, Cout), jnp.bfloat16),
        compiler_params=_cparams(("parallel",)),
    )(*args)
    return out[:G]


def _make_group_all_fc_kernel(n_conv, n_fc, batch, tile_k):
    """group_all SA (MLP chain + running max over point chunks) with the
    encoder FC head (1024->512->256->latent) fused into the last grid step."""
    def kernel(x_ref, *refs):
        acc_ref = refs[-1]                 # scratch (B, conv_out) f32
        o_ref = refs[-2]                   # output  (B, latent)   f32
        p = refs[:-2]
        cin = x_ref.shape[-1]
        h = x_ref[...].reshape(batch * tile_k, cin)      # bf16
        for li in range(n_conv):
            w = p[2 * li][...]
            b = p[2 * li + 1][...]
            y = jnp.dot(h, w, preferred_element_type=jnp.float32) + b
            if li < n_conv - 1:
                h = jnp.maximum(y, 0.0).astype(jnp.bfloat16)
            else:
                h = jnp.maximum(y, 0.0)                  # keep f32 for the max
        cout = h.shape[-1]
        m = jnp.max(h.reshape(batch, tile_k, cout), axis=1)   # (B, Cout) f32
        k = pl.program_id(0)

        @pl.when(k == 0)
        def _():
            acc_ref[...] = m

        @pl.when(k != 0)
        def _():
            acc_ref[...] = jnp.maximum(acc_ref[...], m)

        @pl.when(k == pl.num_programs(0) - 1)
        def _():
            fc = p[2 * n_conv:]
            z = acc_ref[...].astype(jnp.bfloat16)
            for li in range(n_fc):
                w = fc[2 * li][...]
                b = fc[2 * li + 1][...]
                zz = jnp.maximum(
                    jnp.dot(z, w, preferred_element_type=jnp.float32) + b, 0.0)
                z = zz.astype(jnp.bfloat16) if li < n_fc - 1 else zz
            o_ref[...] = z
    return kernel


def group_all_encode(x, conv_layers, fc_layers, target_rows=TARGET_SA_ROWS):
    """x: [B, N, Cin] bf16. Returns [B, latent] f32 (max over N, then FC head)."""
    B, N, Cin = x.shape
    conv_out = conv_layers[-1][0].shape[1]
    latent = fc_layers[-1][0].shape[1]
    tile_k = max(8, (target_rows // max(B, 1)) // 8 * 8)
    tile_k = min(tile_k, _round_up(N, 8))
    Npad = _round_up(N, tile_k)
    if Npad != N:
        # edge-pad (replicate last point): idempotent w.r.t. the max reduction
        x = jnp.pad(x, ((0, 0), (0, Npad - N), (0, 0)), mode="edge")

    in_specs = [pl.BlockSpec((B, tile_k, Cin), lambda k: (0, k, 0))]
    args = [x]
    for (w, b) in list(conv_layers) + list(fc_layers):
        in_specs.append(pl.BlockSpec(w.shape, lambda k: (0, 0)))
        in_specs.append(pl.BlockSpec(b.shape, lambda k: (0, 0)))
        args += [w, b]

    return pl.pallas_call(
        _make_group_all_fc_kernel(len(conv_layers), len(fc_layers), B, tile_k),
        grid=(Npad // tile_k,),
        in_specs=in_specs,
        out_specs=pl.BlockSpec((B, latent), lambda k: (0, 0)),   # resident output
        out_shape=jax.ShapeDtypeStruct((B, latent), jnp.float32),
        scratch_shapes=[pltpu.VMEM((B, conv_out), jnp.float32)],
        compiler_params=_cparams(("arbitrary",)),
    )(*args)


def _make_posenc_net_kernel(rest_acts, n_rest):
    """Fused positional encoding + latent + implicit MLP, TRANSPOSED layout.

    Everything carries features on sublanes and query points on lanes, so the
    (Cout, tile_r) result is stored lane-dense and no runtime concat is built.
    """
    def kernel(coords_ref, lat_ref, fmat_ref, wsin_ref, wcos_ref, wid_ref,
               wlat_ref, b0_ref, *refs):
        o_ref = refs[-1]
        p = refs[:-1]
        c = coords_ref[0]                                        # (F, tile_r) f32
        # angles for all frequencies at once (tiny f32 matmul, lane-dense result)
        ang = jnp.dot(fmat_ref[...], c, preferred_element_type=jnp.float32)
        sin_a = jnp.sin(ang).astype(jnp.bfloat16)                # EUP
        cos_a = jnp.cos(ang).astype(jnp.bfloat16)
        lat = lat_ref[0].astype(jnp.bfloat16)                    # (latent, 1)
        # layer 0 == W1 applied to [sin, cos, id(x nfreq, folded), latent]
        y = jnp.dot(wsin_ref[...], sin_a, preferred_element_type=jnp.float32)
        y = y + jnp.dot(wcos_ref[...], cos_a, preferred_element_type=jnp.float32)
        y = y + jnp.dot(wid_ref[...], c.astype(jnp.bfloat16),
                        preferred_element_type=jnp.float32)
        y = y + (jnp.dot(wlat_ref[...], lat, preferred_element_type=jnp.float32)
                 + b0_ref[...])                                  # (hidden, 1) bcast
        h = jnp.maximum(y, 0.0).astype(jnp.bfloat16)
        for li in range(n_rest):
            w = p[2 * li][...]                                   # (Co, Ci) bf16
            b = p[2 * li + 1][...]                               # (Co, 1)  f32
            z = rest_acts[li](jnp.dot(w, h, preferred_element_type=jnp.float32) + b)
            h = z if li == n_rest - 1 else z.astype(jnp.bfloat16)
        o_ref[...] = h[None]                                     # (1, Cout, tile_r)
    return kernel


def posenc_net(coords, pc_latent, enc_params, rest_layers, rest_acts,
               target_lanes=TARGET_MLP_LANES):
    """coords: [B, Np, F] f32; pc_latent: [B, latent] f32 -> [B, Np, out]."""
    B, Np, F = coords.shape
    fmat, wsin, wcos, wid, wlat, b0 = enc_params
    latent = pc_latent.shape[1]
    Cout = rest_layers[-1][0].shape[0]
    if Np >= target_lanes:
        tile_r, Np_p = target_lanes, _round_up(Np, target_lanes)
    else:
        tile_r = Np_p = _round_up(Np, 128)

    coords_t = jnp.transpose(coords, (0, 2, 1))                  # (B, F, Np)
    if Np_p != Np:
        coords_t = jnp.pad(coords_t, ((0, 0), (0, 0), (0, Np_p - Np)))
    lat3 = pc_latent.reshape(B, latent, 1)
    tiles = Np_p // tile_r

    in_specs = [
        pl.BlockSpec((1, F, tile_r), lambda b, i: (b, 0, i)),
        pl.BlockSpec((1, latent, 1), lambda b, i: (b, 0, 0)),
        pl.BlockSpec(fmat.shape, lambda b, i: (0, 0)),
        pl.BlockSpec(wsin.shape, lambda b, i: (0, 0)),
        pl.BlockSpec(wcos.shape, lambda b, i: (0, 0)),
        pl.BlockSpec(wid.shape, lambda b, i: (0, 0)),
        pl.BlockSpec(wlat.shape, lambda b, i: (0, 0)),
        pl.BlockSpec(b0.shape, lambda b, i: (0, 0)),
    ]
    args = [coords_t, lat3, fmat, wsin, wcos, wid, wlat, b0]
    for (w, b) in rest_layers:
        in_specs.append(pl.BlockSpec(w.shape, lambda bb, ii: (0, 0)))
        in_specs.append(pl.BlockSpec(b.shape, lambda bb, ii: (0, 0)))
        args += [w, b]

    out = pl.pallas_call(
        _make_posenc_net_kernel(rest_acts, len(rest_layers)),
        grid=(B, tiles),
        in_specs=in_specs,
        out_specs=pl.BlockSpec((1, Cout, tile_r), lambda b, i: (b, 0, i)),
        out_shape=jax.ShapeDtypeStruct((B, Cout, Np_p), jnp.float32),
        compiler_params=_cparams(("parallel", "parallel")),
    )(*args)
    return jnp.transpose(out[:, :, :Np], (0, 2, 1))              # (B, Np, Cout)


# ----------------------------------------------------------------------------
# Plain-JAX glue: sampling / grouping (data-dependent gathers)
# ----------------------------------------------------------------------------
def index_points(points, idx):
    # points [B,N,C], idx [B,...] -> [B,...,C]
    return jax.vmap(lambda p, i: p[i])(points, idx)


def square_distance(src, dst):
    dist = -2.0 * jnp.matmul(src, jnp.swapaxes(dst, 1, 2))
    dist = dist + jnp.sum(src ** 2, -1)[:, :, None]
    dist = dist + jnp.sum(dst ** 2, -1)[:, None, :]
    return dist


def farthest_point_sample(xyz, npoint):
    # TODO(synk): torch uses a random first centroid (torch.randint); replaced with
    # a fixed-key deterministic choice for reproducibility.
    B, N, _ = xyz.shape
    farthest0 = jax.random.randint(jax.random.PRNGKey(1), (B,), 0, N, dtype=jnp.int32)

    def body(i, state):
        centroids, distance, farthest = state
        centroids = centroids.at[:, i].set(farthest)
        centroid = jax.vmap(lambda p, f: p[f])(xyz, farthest)[:, None, :]   # [B,1,3]
        dist = jnp.sum((xyz - centroid) ** 2, -1)
        distance = jnp.minimum(distance, dist)
        farthest = jnp.argmax(distance, axis=-1).astype(jnp.int32)
        return centroids, distance, farthest

    centroids = jnp.zeros((B, npoint), jnp.int32)
    distance = jnp.full((B, N), 1e10, jnp.float32)
    centroids, _, _ = lax.fori_loop(0, npoint, body, (centroids, distance, farthest0))
    return centroids


def query_ball_point(radius, nsample, xyz, new_xyz):
    B, N, _ = xyz.shape
    S = new_xyz.shape[1]
    group_idx = jnp.broadcast_to(jnp.arange(N, dtype=jnp.int32)[None, None, :], (B, S, N))
    sqr = square_distance(new_xyz, xyz)
    group_idx = jnp.where(sqr > radius ** 2, N, group_idx)
    group_idx = jnp.sort(group_idx, axis=-1)[:, :, :nsample]
    group_first = group_idx[:, :, 0:1]
    group_idx = jnp.where(group_idx == N, group_first, group_idx)
    return group_idx


def set_abstraction(xyz, points, cfg, layers):
    """xyz: [B,N,3] f32 (channels-last), points: [B,N,D]. Returns ([B,S,3], [B,S,Cout] bf16)."""
    B, N, _ = xyz.shape
    npoint, radius, nsample = cfg["npoint"], cfg["radius"], cfg["nsample"]
    fps_idx = farthest_point_sample(xyz, npoint)
    new_xyz = index_points(xyz, fps_idx)                           # [B,S,3]
    idx = query_ball_point(radius, nsample, xyz, new_xyz)          # [B,S,K]
    grouped_xyz = index_points(xyz, idx)                           # [B,S,K,3]
    grouped_xyz_norm = (grouped_xyz - new_xyz[:, :, None, :]).astype(jnp.bfloat16)
    grouped_pts = index_points(points, idx).astype(jnp.bfloat16)
    new_points = jnp.concatenate([grouped_xyz_norm, grouped_pts], axis=-1)
    Cin = new_points.shape[-1]
    x = new_points.reshape(B * npoint, nsample, Cin)               # bf16
    out = sa_mlp_max(x, layers)
    return new_xyz, out.reshape(B, npoint, -1)


# ----------------------------------------------------------------------------
# Parameter init (deterministic, synthetic); BN folded into conv weights
# ----------------------------------------------------------------------------
def _init_linear(key, cin, cout, scale=0.05):
    kw, kb = jax.random.split(key)
    w = scale * jax.random.normal(kw, (cin, cout), jnp.float32)
    b = scale * jax.random.normal(kb, (1, cout), jnp.float32)
    return w.astype(jnp.bfloat16), b                 # bf16 weights, f32 bias


def _init_linear_raw(key, cin, cout, scale=0.05):
    kw, kb = jax.random.split(key)
    w = scale * jax.random.normal(kw, (cin, cout), jnp.float32)
    b = scale * jax.random.normal(kb, (1, cout), jnp.float32)
    return w, b                                      # f32 (decomposed later)


def _init_conv_bn_folded(key, cin, cout, scale=0.05, eps=1e-5):
    kw, kb, kg, kbeta = jax.random.split(key, 4)
    w = scale * jax.random.normal(kw, (cin, cout), jnp.float32)
    b = scale * jax.random.normal(kb, (1, cout), jnp.float32)
    gamma = 1.0 + 0.05 * jax.random.normal(kg, (1, cout), jnp.float32)
    beta = 0.05 * jax.random.normal(kbeta, (1, cout), jnp.float32)
    running_mean = jnp.zeros((1, cout), jnp.float32)
    running_var = jnp.ones((1, cout), jnp.float32)
    s = gamma / jnp.sqrt(running_var + eps)          # eval-mode BN scale
    t = beta - running_mean * s                      # eval-mode BN shift
    w_fold = (w * s).astype(jnp.bfloat16)            # fold scale into weights
    b_fold = b * s + t                               # fold into bias (f32)
    return w_fold, b_fold


# ----------------------------------------------------------------------------
# Model
# ----------------------------------------------------------------------------
class PointNetPPSR3D:
    def __init__(self, key, in_features, hidden_layers, hidden_features, out_features,
                 pc_channel, latent_feats, pos_freq_const, pos_freq_num, sa_cfgs):
        self.latent_feats = latent_feats
        self.sa_cfgs = sa_cfgs
        # TODO(synk): PositionalEncoding source not provided; standard
        # sin/cos/identity encoding producing in_features * pos_freq_num * 3 features.
        self.freqs = [float(pos_freq_const) ** (l / pos_freq_num)
                      for l in range(pos_freq_num)]
        posF = in_features * pos_freq_num * 3

        keys = iter(jax.random.split(key, 64))

        # Set-abstraction pointwise-MLP params (Conv2d 1x1 with BN folded in).
        self.sa_params = []
        last = pc_channel
        for cfg in sa_cfgs:
            layers = []
            c = last
            for cout in cfg["mlp"]:
                layers.append(_init_conv_bn_folded(next(keys), c, cout))
                c = cout
            self.sa_params.append(layers)
            last = cfg["mlp"][-1] + 3

        # Encoder FC head: mlp3[-1] -> 512 -> 256 -> latent (all ReLU), fused
        # into the group_all kernel.
        feat_dim = sa_cfgs[-1]["mlp"][-1]
        self.fc_layers = [_init_linear(next(keys), feat_dim, 512),
                          _init_linear(next(keys), 512, 256),
                          _init_linear(next(keys), 256, latent_feats)]

        # Final implicit-MLP net: relu ... relu, sigmoid.
        # TODO(synk): MLPLayer source not provided; implemented as Linear + activation.
        dims = [posF + latent_feats] + [hidden_features] * hidden_layers + [out_features]
        raw = [_init_linear_raw(next(keys), dims[i], dims[i + 1])
               for i in range(len(dims) - 1)]

        # Decompose layer 0 so the encoding never has to be concatenated at
        # runtime.  Encoding column order per freq k: [sin(3F), cos(3F), id(3F)];
        # the identity blocks are folded (summed) into a single (F, hidden) block.
        w0, b0 = raw[0]
        F, nf = in_features, pos_freq_num
        step = 3 * F
        sin_rows, cos_rows, id_blocks = [], [], []
        for k in range(nf):
            base = k * step
            sin_rows.append(w0[base:base + F])
            cos_rows.append(w0[base + F:base + 2 * F])
            id_blocks.append(w0[base + 2 * F:base + 3 * F])
        w_sin = jnp.concatenate(sin_rows, axis=0)          # (F*nf, hidden)
        w_cos = jnp.concatenate(cos_rows, axis=0)
        w_id = jnp.sum(jnp.stack(id_blocks, axis=0), axis=0)   # (F, hidden)
        w_lat = w0[posF:]                                   # (latent, hidden)
        fmat_np = np.zeros((F * nf, F), np.float32)
        for k, fr in enumerate(self.freqs):
            for j in range(F):
                fmat_np[k * F + j, j] = math.pi * fr
        self.enc_params = (
            jnp.asarray(fmat_np),                           # (F*nf, F) f32
            w_sin.T.astype(jnp.bfloat16),                   # (hidden, F*nf)
            w_cos.T.astype(jnp.bfloat16),
            w_id.T.astype(jnp.bfloat16),                    # (hidden, F)
            w_lat.T.astype(jnp.bfloat16),                   # (hidden, latent)
            b0.T,                                           # (hidden, 1) f32
        )
        # remaining layers, transposed for the lane-dense (feature x point) layout
        self.net_rest = [(w.T.astype(jnp.bfloat16), b.T) for (w, b) in raw[1:]]
        self.net_rest_acts = [_relu] * (hidden_layers - 1) + [jax.nn.sigmoid]

    def encode(self, pc, pc_feats):
        # pc: [B,3,N], pc_feats: [B,D,N]  (torch channel-first convention)
        xyz = jnp.transpose(pc, (0, 2, 1))
        pts = jnp.transpose(pc_feats, (0, 2, 1))
        for cfg, layers in zip(self.sa_cfgs[:-1], self.sa_params[:-1]):
            xyz, pts = set_abstraction(xyz, pts, cfg, layers)
        # SA3 (group_all) + encoder FC head fused into one kernel
        x = jnp.concatenate([xyz.astype(jnp.bfloat16), pts.astype(jnp.bfloat16)],
                            axis=-1)                               # [B, N, 3+D]
        return group_all_encode(x, self.sa_params[-1], self.fc_layers)   # [B, latent]

    def forward(self, coords, pc, pc_feats):
        pc_latent = self.encode(pc, pc_feats)                      # [B, latent]
        # positional encoding + latent broadcast fused into the implicit-MLP kernel
        return posenc_net(coords, pc_latent, self.enc_params,
                          self.net_rest, self.net_rest_acts)       # [B, Np, out]


# ----------------------------------------------------------------------------
if __name__ == "__main__":
    key = jax.random.PRNGKey(0)
    k_model, k_coords, k_pc, k_feat = jax.random.split(key, 4)

    B, N, Np = 2, 64, 64       # batch, input points, query coordinates
    Dfeat = 1                  # per-point scalar feature (e.g. pressure)
    pc_channel = 3 + Dfeat     # SA1 in_channel (xyz-offset + feature), as in the module
    latent_feats = 32

    # Small SA hyper-params (npoint/nsample scaled down from 512/32 & 128/64 for a
    # small synthetic run); MLP channel widths match the module exactly.
    sa_cfgs = [
        dict(npoint=16, radius=0.1, nsample=8, group_all=False, mlp=[64, 64, 128]),
        dict(npoint=8, radius=0.2, nsample=8, group_all=False, mlp=[128, 128, 256]),
        dict(npoint=None, radius=None, nsample=None, group_all=True, mlp=[256, 512, 1024]),
    ]

    model = PointNetPPSR3D(
        k_model,
        in_features=3, hidden_layers=2, hidden_features=32, out_features=1,
        pc_channel=pc_channel, latent_feats=latent_feats,
        pos_freq_const=10, pos_freq_num=10,
        sa_cfgs=sa_cfgs,
    )

    coords = jax.random.uniform(k_coords, (B, Np, 3), jnp.float32, minval=-1.0, maxval=1.0)
    pc = jax.random.uniform(k_pc, (B, 3, N), jnp.float32)
    pc_feats = jax.random.uniform(k_feat, (B, Dfeat, N), jnp.float32)

    out = model.forward(coords, pc, pc_feats)
    out = jax.block_until_ready(out)
    assert out.shape == (B, Np, 1)
    assert bool(jnp.all(jnp.isfinite(out)))
    print("KERNEL_OK")
</pallas_src>

<mosaic_0001>
module attributes {stable_mosaic.version = 11 : i64} {
  func.func @kernel(%arg0: i32, %arg1: memref<256x4xbf16, #tpu.memory_space<vmem>>, %arg2: memref<4x64xbf16, #tpu.memory_space<vmem>>, %arg3: memref<1x64xf32, #tpu.memory_space<vmem>>, %arg4: memref<64x64xbf16, #tpu.memory_space<vmem>>, %arg5: memref<1x64xf32, #tpu.memory_space<vmem>>, %arg6: memref<64x128xbf16, #tpu.memory_space<vmem>>, %arg7: memref<1x128xf32, #tpu.memory_space<vmem>>, %arg8: memref<32x128xbf16, #tpu.memory_space<vmem>>) attributes {dimension_semantics = [#tpu.dimension_semantics<parallel>], iteration_bounds = array<i64: 1>, scalar_prefetch = 0 : i64, scratch_operands = 0 : i64, tpu.core_type = #tpu.core_type<tc>, window_params = [{transform_indices = @transform_0, window_bounds = array<i64: 256, 4>}, {pipeline_mode = #tpu.pipeline_mode<synchronous>, transform_indices = @transform_1, window_bounds = array<i64: 4, 64>}, {pipeline_mode = #tpu.pipeline_mode<synchronous>, transform_indices = @transform_2, window_bounds = array<i64: 1, 64>}, {pipeline_mode = #tpu.pipeline_mode<synchronous>, transform_indices = @transform_3, window_bounds = array<i64: 64, 64>}, {pipeline_mode = #tpu.pipeline_mode<synchronous>, transform_indices = @transform_4, window_bounds = array<i64: 1, 64>}, {pipeline_mode = #tpu.pipeline_mode<synchronous>, transform_indices = @transform_5, window_bounds = array<i64: 64, 128>}, {pipeline_mode = #tpu.pipeline_mode<synchronous>, transform_indices = @transform_6, window_bounds = array<i64: 1, 128>}, {transform_indices = @transform_7, window_bounds = array<i64: 32, 128>}]} {
    %c0 = arith.constant 0 : index
    %c0_0 = arith.constant 0 : index
    %0 = vector.load %arg1[%c0, %c0_0] : memref<256x4xbf16, #tpu.memory_space<vmem>>, vector<256x4xbf16>
    %c0_1 = arith.constant 0 : index
    %c0_2 = arith.constant 0 : index
    %1 = vector.load %arg2[%c0_1, %c0_2] : memref<4x64xbf16, #tpu.memory_space<vmem>>, vector<4x64xbf16>
    %c0_3 = arith.constant 0 : index
    %c0_4 = arith.constant 0 : index
    %2 = vector.load %arg3[%c0_3, %c0_4] : memref<1x64xf32, #tpu.memory_space<vmem>>, vector<1x64xf32>
    %cst = arith.constant dense<0.000000e+00> : vector<256x64xf32>
    %3 = tpu.matmul %0, %1, %cst {dimension_numbers = #tpu.dot_dimension_numbers<[1], [0], [0], [1], [0, 0, 1, 1], [], []>} : vector<256x4xbf16>, vector<4x64xbf16>, vector<256x64xf32> -> vector<256x64xf32>
    %4 = vector.broadcast %2 : vector<1x64xf32> to vector<256x64xf32>
    %5 = arith.addf %3, %4 : vector<256x64xf32>
    %cst_5 = arith.constant 0.000000e+00 : f32
    %6 = vector.broadcast %cst_5 : f32 to vector<256x64xf32>
    %7 = arith.maximumf %5, %6 : vector<256x64xf32>
    %8 = arith.truncf %7 : vector<256x64xf32> to vector<256x64xbf16>
    %c0_6 = arith.constant 0 : index
    %c0_7 = arith.constant 0 : index
    %9 = vector.load %arg4[%c0_6, %c0_7] : memref<64x64xbf16, #tpu.memory_space<vmem>>, vector<64x64xbf16>
    %c0_8 = arith.constant 0 : index
    %c0_9 = arith.constant 0 : index
    %10 = vector.load %arg5[%c0_8, %c0_9] : memref<1x64xf32, #tpu.memory_space<vmem>>, vector<1x64xf32>
    %cst_10 = arith.constant dense<0.000000e+00> : vector<256x64xf32>
    %11 = tpu.matmul %8, %9, %cst_10 {dimension_numbers = #tpu.dot_dimension_numbers<[1], [0], [0], [1], [0, 0, 1, 1], [], []>} : vector<256x64xbf16>, vector<64x64xbf16>, vector<256x64xf32> -> vector<256x64xf32>
    %12 = vector.broadcast %10 : vector<1x64xf32> to vector<256x64xf32>
    %13 = arith.addf %11, %12 : vector<256x64xf32>
    %cst_11 = arith.constant 0.000000e+00 : f32
    %14 = vector.broadcast %cst_11 : f32 to vector<256x64xf32>
    %15 = arith.maximumf %13, %14 : vector<256x64xf32>
    %16 = arith.truncf %15 : vector<256x64xf32> to vector<256x64xbf16>
    %c0_12 = arith.constant 0 : index
    %c0_13 = arith.constant 0 : index
    %17 = vector.load %arg6[%c0_12, %c0_13] : memref<64x128xbf16, #tpu.memory_space<vmem>>, vector<64x128xbf16>
    %c0_14 = arith.constant 0 : index
    %c0_15 = arith.constant 0 : index
    %18 = vector.load %arg7[%c0_14, %c0_15] : memref<1x128xf32, #tpu.memory_space<vmem>>, vector<1x128xf32>
    %cst_16 = arith.constant dense<0.000000e+00> : vector<256x128xf32>
    %19 = tpu.matmul %16, %17, %cst_16 {dimension_numbers = #tpu.dot_dimension_numbers<[1], [0], [0], [1], [0, 0, 1, 1], [], []>} : vector<256x64xbf16>, vector<64x128xbf16>, vector<256x128xf32> -> vector<256x128xf32>
    %20 = vector.broadcast %18 : vector<1x128xf32> to vector<256x128xf32>
    %21 = arith.addf %19, %20 : vector<256x128xf32>
    %cst_17 = arith.constant 0.000000e+00 : f32
    %22 = vector.broadcast %cst_17 : f32 to vector<256x128xf32>
    %23 = arith.maximumf %21, %22 : vector<256x128xf32>
    %24 = arith.truncf %23 : vector<256x128xf32> to vector<256x128xbf16>
    %25 = vector.shape_cast %24 : vector<256x128xbf16> to vector<32x8x128xbf16>
    %cst_18 = arith.constant dense<0xFF80> : vector<32x128xbf16>
    %26 = vector.multi_reduction <maximumf>, %25, %cst_18 [1] : vector<32x8x128xbf16> to vector<32x128xbf16>
    %c0_19 = arith.constant 0 : index
    %c0_20 = arith.constant 0 : index
    %27 = vector.load %arg8[%c0_19, %c0_20] : memref<32x128xbf16, #tpu.memory_space<vmem>>, vector<32x128xbf16>
    tpu.vector_store %arg8[%c0_19, %c0_20], %26 {strides = array<i32>} : memref<32x128xbf16, #tpu.memory_space<vmem>>, vector<32x128xbf16>,
    return
  }
  func.func @transform_0(%arg0: i32) -> (i32, i32) {
    %c0_i32 = arith.constant 0 : i32
    %c0_i32_0 = arith.constant 0 : i32
    return %arg0, %c0_i32 : i32, i32
  }
  func.func @transform_1(%arg0: i32) -> (i32, i32) {
    %c0_i32 = arith.constant 0 : i32
    %c0_i32_0 = arith.constant 0 : i32
    %c0_i32_1 = arith.constant 0 : i32
    return %c0_i32, %c0_i32_0 : i32, i32
  }
  func.func @transform_2(%arg0: i32) -> (i32, i32) {
    %c0_i32 = arith.constant 0 : i32
    %c0_i32_0 = arith.constant 0 : i32
    %c0_i32_1 = arith.constant 0 : i32
    return %c0_i32, %c0_i32_0 : i32, i32
  }
  func.func @transform_3(%arg0: i32) -> (i32, i32) {
    %c0_i32 = arith.constant 0 : i32
    %c0_i32_0 = arith.constant 0 : i32
    %c0_i32_1 = arith.constant 0 : i32
    return %c0_i32, %c0_i32_0 : i32, i32
  }
  func.func @transform_4(%arg0: i32) -> (i32, i32) {
    %c0_i32 = arith.constant 0 : i32
    %c0_i32_0 = arith.constant 0 : i32
    %c0_i32_1 = arith.constant 0 : i32
    return %c0_i32, %c0_i32_0 : i32, i32
  }
  func.func @transform_5(%arg0: i32) -> (i32, i32) {
    %c0_i32 = arith.constant 0 : i32
    %c0_i32_0 = arith.constant 0 : i32
    %c0_i32_1 = arith.constant 0 : i32
    return %c0_i32, %c0_i32_0 : i32, i32
  }
  func.func @transform_6(%arg0: i32) -> (i32, i32) {
    %c0_i32 = arith.constant 0 : i32
    %c0_i32_0 = arith.constant 0 : i32
    %c0_i32_1 = arith.constant 0 : i32
    return %c0_i32, %c0_i32_0 : i32, i32
  }
  func.func @transform_7(%arg0: i32) -> (i32, i32) {
    %c0_i32 = arith.constant 0 : i32
    %c0_i32_0 = arith.constant 0 : i32
    return %arg0, %c0_i32 : i32, i32
  }
}

</mosaic_0001>

<bundles_post_ra>
// kernel: tpu_custom_call.1
= control target key start
LH: loop header
LB: loop body
LE: loop exit
PB: predicated region body
PF: predicated region fallthrough
CT: control target
= control target key end

     0   :  { %vm198_vm0 = vcmask 1041408   ;;  %vm149_vm1 = vcmask 31744   ;;  %s2476_s0 = inlined_call_operand.vmem [shape: bf16[256,4], index: 0, kind: input, shape index: {}]   ;;  %s2477_s1 = inlined_call_operand.vmem [shape: bf16[4,64], index: 1, kind: input, shape index: {}]   ;;  %s2478_s2 = inlined_call_operand.vmem [shape: f32[1,64], index: 2, kind: input, shape index: {}]   ;;  %s2479_s3 = inlined_call_operand.vmem [shape: bf16[64,64], index: 3, kind: input, shape index: {}]   ;;  %s2480_s4 = inlined_call_operand.vmem [shape: f32[1,64], index: 4, kind: input, shape index: {}]   ;;  %s2481_s5 = inlined_call_operand.vmem [shape: bf16[64,128], index: 5, kind: input, shape index: {}]   ;;  %s2482_s6 = inlined_call_operand.vmem [shape: f32[1,128], index: 6, kind: input, shape index: {}]   ;;  %s2483_s7 = inlined_call_operand.hbm [shape: bf16[32,128], index: 7, kind: output, shape index: {}]  }
   0x1   :  { %v61_v0 = vld [vmem:[%s2477_s1] sm:$0x3]  ;;  %v2043_v3 = vld [vmem:[%s2476_s0 + $0x8] sm:$0xff]   ;;  %v2044_v4 = vld [vmem:[%s2476_s0 + $0x10] sm:$0xff]  }
   0x2   :  { %v2042_v1 = vld [vmem:[%s2476_s0] sm:$0xff]   ;;  %2037 = vmatprep.subr.msk.bf16.mxu0 %vm198_vm0, %v61_v0  ;;  %v200_v2 = vsel %vm198_vm0, %v61_v0, 0  ;;  %2038 = vmatprep.subr.msk.bf16.mxu1 %vm198_vm0, %v61_v0  ;;  %v2045_v5 = vld [vmem:[%s2476_s0 + $0x18] sm:$0xff]   ;;  %v2051_v8 = vld [vmem:[%s2476_s0 + $0x48] sm:$0xff]  }
   0x3   :  { %1922 = vmatpush3.bf16.msra.mxu0 %v200_v2  ;;  %1923 = vmatprep.mubr.msk.bf16.mxu0 %vm149_vm1, %v2042_v1  ;;  %v2046_v6 = vld [vmem:[%s2476_s0 + $0x20] sm:$0xff]   ;;  %v2052_v9 = vld [vmem:[%s2476_s0 + $0x50] sm:$0xff]   ;;  %v2047_v10 = vld [vmem:[%s2476_s0 + $0x28] sm:$0xff]  }
   0x4   :  { %2036 = vmatpush3.bf16.msra.mxu1 %v200_v2  ;;  %v2050_v7 = vld [vmem:[%s2476_s0 + $0x40] sm:$0xff]   ;;  %v2053_v11 = vld [vmem:[%s2476_s0 + $0x58] sm:$0xff]   ;;  %v2048_v14 = vld [vmem:[%s2476_s0 + $0x30] sm:$0xff]  }
   0x5   :  { %1939 = vmatprep.mubr.msk.bf16.mxu1 %vm149_vm1, %v2050_v7  ;;  %v2054_v12 = vld [vmem:[%s2476_s0 + $0x60] sm:$0xff]   ;;  %v2058_v13 = vld [vmem:[%s2479_s3 + $0x18] sm:$0xff]   ;;  %v2059_v15 = vld [vmem:[%s2479_s3 + $0x10] sm:$0xff]  }
   0x6   :  { %1924 = vmatmul.mubr.msk.bf16.vlgmr.msra.gmra.mxu0 %vm149_vm1, %v2043_v3  ;;  %1955 = vmatprep.subr.bf16.mxu1 %v2058_v13  ;;  %v2060_v16 = vld [vmem:[%s2479_s3 + $0x8] sm:$0xff]  }
   0x7   :  { %1927 = vmatprep.mubr.msk.bf16.mxu0 %vm149_vm1, %v2044_v4  ;;  %1940 = vmatmul.mubr.msk.bf16.vlgmr.msra.gmra.mxu1 %vm149_vm1, %v2051_v8 }
   0x8   :  { %1943 = vmatprep.mubr.msk.bf16.mxu1 %vm149_vm1, %v2052_v9  ;;  %1956 = vmatpush3.bf16.msra.mxu1 %v2058_v13 }
   0x9   :  { %1957 = vmatprep.subr.bf16.mxu1 %v2059_v15 }
   0xe   :  { %1928 = vmatmul.mubr.msk.bf16.gmra.mxu0 %vm149_vm1, %v2045_v5 }
   0xf   :  { %1931 = vmatprep.mubr.msk.bf16.mxu0 %vm149_vm1, %v2046_v6  ;;  %1944 = vmatmul.mubr.msk.bf16.gmra.mxu1 %vm149_vm1, %v2053_v11 }
  0x10   :  { %1947 = vmatprep.mubr.msk.bf16.mxu1 %vm149_vm1, %v2054_v12 }
  0x16   :  { %1932 = vmatmul.mubr.msk.bf16.gmra.mxu0 %vm149_vm1, %v2047_v10 }
  0x17   :  { %1935 = vmatprep.mubr.msk.bf16.mxu0 %vm149_vm1, %v2048_v14 }
  0x18   :  { %12 = vsyncpa [#allocation3], 0  ;;  %v2055_v17 = vld [vmem:[%s2476_s0 + $0x68] sm:$0xff]   ;;  %v2049_v18 = vld [vmem:[%s2476_s0 + $0x38] sm:$0xff]   ;;  %1958 = vmatpush3.bf16.msra.mxu1 %v2059_v15  ;;  %vm450_vm2 = vcmask 523264   ;;  %vm1084_vm3 = vcmask 1043456  }
  0x19   :  { %v2056_v19 = vld [vmem:[%s2476_s0 + $0x70] sm:$0xff]   ;;  %1959 = vmatprep.subr.bf16.mxu1 %v2060_v16  ;;  %1948 = vmatmul.mubr.msk.bf16.gmra.mxu1 %vm149_vm1, %v2055_v17  ;;  %v2057_v20 = vld [vmem:[%s2476_s0 + $0x78] sm:$0xff]   ;;  %v2061_v21 = vld [vmem:[%s2479_s3] sm:$0xff]   ;;  %vm1630_vm4 = vcmask 1041409   ;;  %vm1632_vm5 = vcmask 1042434   ;;  %vm1634_vm6 = vcmask 1043459  }
  0x1a   :  { %1951 = vmatprep.mubr.msk.bf16.mxu1 %vm149_vm1, %v2056_v19  ;;  %v2062_v22 = vld [vmem:[%s2481_s5 + $0x18] sm:$0xff]   ;;  %v2063_v23 = vld [vmem:[%s2481_s5 + $0x10] sm:$0xff]   ;;  %v2064_v24 = vld [vmem:[%s2481_s5 + $0x8] sm:$0xff]   ;;  %vm1636_vm7 = vcmask 1044484   ;;  %vm1638_vm8 = vcmask 1045509   ;;  %vm1640_vm9 = vcmask 1046534  }
  0x1b   :  { %1995 = vmatprep.subr.bf16.mxu0 %v2062_v22  ;;  %v2222_v27 = vld [vmem:[%s2478_s2] ss:$0 sm:$0xff]  ;;  %vm1642_vm10 = vcmask 1047559  }
  0x1c   :  { %1960 = vmatpush3.bf16.msra.mxu1 %v2060_v16  ;;  %1996 = vmatpush3.bf16.msra.mxu0 %v2062_v22 }
  0x1d   :  { %1961 = vmatprep.subr.bf16.mxu1 %v2061_v21  ;;  %1997 = vmatprep.subr.bf16.mxu0 %v2063_v23 }
  0x1e   :  { %1936 = vmatmul.mubr.msk.bf16.gmra.mxu0 %vm149_vm1, %v2049_v18 }
  0x20   :  { %1962 = vmatpush3.bf16.msra.mxu1 %v2061_v21  ;;  %1998 = vmatpush3.bf16.msra.mxu0 %v2063_v23 }
  0x21   :  { %1952 = vmatmul.mubr.msk.bf16.gmra.mxu1 %vm149_vm1, %v2057_v20  ;;  %1999 = vmatprep.subr.bf16.mxu0 %v2064_v24 }
  0x24   :  { %2000 = vmatpush3.bf16.msra.mxu0 %v2064_v24 }
  0xc6   :  { %v1925_v25 = vpop.f32.mrf.mxu0 }
  0xc7   :  { %v245_v31 = vadd.f32 %v1925_v25, %v2222_v27  ;;  %v2228_v34 = vpop.f32.mrf.mxu1 }
  0xc8   :  { %v236_v26 = vpop.f32.mrf.mxu0 }
  0xc9   :  { %v237_v29 = vadd.f32 %v2222_v27, %v236_v26  ;;  %v300_v39 = vpop.f32.mrf.mxu1  ;;  %v365_v40 = vmax.f32 %v245_v31, 0.0 }
  0xca   :  { %v1926_v28 = vpop.f32.mrf.mxu0  ;;  %v301_v15 = vadd.f32 %v2222_v27, %v300_v39 }
  0xcb   :  { %v248_v30 = vadd.f32 %v1926_v28, %v2222_v27  ;;  %v363_v37 = vmax.f32 %v237_v29, 0.0  ;;  %v2230_v43 = vpop.f32.mrf.mxu1 }
  0xcc   :  { %v239_v32 = vpop.f32.mrf.mxu0  ;;  %v379_v24 = vmax.f32 %v301_v15, 0.0 }
  0xcd   :  { %v240_v33 = vadd.f32 %v2222_v27, %v239_v32  ;;  %v366_v35 = vmax.f32 %v248_v30, 0.0  ;;  %v303_v48 = vpop.f32.mrf.mxu1 }
  0xce   :  { %v1929_v36 = vpop.f32.mrf.mxu0  ;;  %v304_v16 = vadd.f32 %v2222_v27, %v303_v48 }
  0xcf   :  { %v364_v38 = vmax.f32 %v240_v33, 0.0  ;;  %v396_v44 = vpack.c.bf16 %v366_v35, %v365_v40  ;;  %v261_v49 = vadd.f32 %v1929_v36, %v2222_v27  ;;  %v2238_v52 = vpop.f32.mrf.mxu1  ;;  %v312_v40 = vadd.f32 %v2230_v43, %v2222_v27 }
  0xd0   :  { %v252_v41 = vpop.f32.mrf.mxu0  ;;  %v380_v26 = vmax.f32 %v304_v16, 0.0  ;;  %v325_v43 = vadd.f32 %v2238_v52, %v2222_v27 }
  0xd1   :  { %v395_v42 = vpack.c.bf16 %v364_v38, %v363_v37  ;;  %v253_v46 = vadd.f32 %v2222_v27, %v252_v41  ;;  %v316_v57 = vpop.f32.mrf.mxu1  ;;  %v369_v58 = vmax.f32 %v261_v49, 0.0  ;;  %v309_v38 = vadd.f32 %v2228_v34, %v2222_v27 }
  0xd2   :  { %v1930_v45 = vpop.f32.mrf.mxu0  ;;  %v403_v35 = vpack.c.bf16 %v380_v26, %v379_v24  ;;  %v317_v36 = vadd.f32 %v2222_v27, %v316_v57 }
  0xd3   :  { %v264_v47 = vadd.f32 %v1930_v45, %v2222_v27  ;;  %1963 = vmatprep.mubr.msk.bf16.mxu1 %vm450_vm2, %v395_v42  ;;  %v367_v55 = vmax.f32 %v253_v46, 0.0  ;;  %v1946_v61 = vpop.f32.mrf.mxu1  ;;  %v381_v45 = vmax.f32 %v309_v38, 0.0  ;;  %v382_v46 = vmax.f32 %v312_v40, 0.0 }
  0xd4   :  { %v255_v50 = vpop.f32.mrf.mxu0  ;;  %1964 = vmatmul.mubr.msk.bf16.vlgmr.msra.gmra.mxu1 %vm450_vm2, %v396_v44  ;;  %v383_v42 = vmax.f32 %v317_v36, 0.0 }
  0xd5   :  { %v256_v51 = vadd.f32 %v2222_v27, %v255_v50  ;;  %v370_v53 = vmax.f32 %v264_v47, 0.0  ;;  %v319_v2 = vpop.f32.mrf.mxu1  ;;  %v404_v50 = vpack.c.bf16 %v382_v46, %v381_v45 }
  0xd6   :  { %v1933_v54 = vpop.f32.mrf.mxu0  ;;  %v320_v37 = vadd.f32 %v2222_v27, %v319_v2 }
  0xd7   :  { %v368_v56 = vmax.f32 %v256_v51, 0.0  ;;  %v398_v62 = vpack.c.bf16 %v370_v53, %v369_v58  ;;  %v277_v3 = vadd.f32 %v1933_v54, %v2222_v27  ;;  %v328_v51 = vadd.f32 %v1946_v61, %v2222_v27 }
  0xd8   :  { %v268_v59 = vpop.f32.mrf.mxu0  ;;  %v384_v44 = vmax.f32 %v320_v37, 0.0 }
  0xd9   :  { %v397_v60 = vpack.c.bf16 %v368_v56, %v367_v55  ;;  %v269_v0 = vadd.f32 %v2222_v27, %v268_v59  ;;  %v1949_v6 = vpop.f32.mrf.mxu1  ;;  %v373_v12 = vmax.f32 %v277_v3, 0.0  ;;  %v385_v56 = vmax.f32 %v325_v43, 0.0 }
  0xda   :  { %v1934_v63 = vpop.f32.mrf.mxu0  ;;  %v405_v48 = vpack.c.bf16 %v384_v44, %v383_v42  ;;  %v386_v57 = vmax.f32 %v328_v51, 0.0  ;;  %v341_v52 = vadd.f32 %v1949_v6, %v2222_v27 }
  0xdb   :  { %v280_v1 = vadd.f32 %v1934_v63, %v2222_v27  ;;  %1967 = vmatprep.mubr.msk.bf16.mxu1 %vm450_vm2, %v397_v60  ;;  %v371_v9 = vmax.f32 %v269_v0, 0.0  ;;  %v332_v11 = vpop.f32.mrf.mxu1 }
  0xdc   :  { %v271_v4 = vpop.f32.mrf.mxu0  ;;  %1968 = vmatmul.mubr.msk.bf16.gmra.mxu1 %vm450_vm2, %v398_v62  ;;  %v333_v49 = vadd.f32 %v2222_v27, %v332_v11  ;;  %v406_v63 = vpack.c.bf16 %v386_v57, %v385_v56  ;;  %v389_v2 = vmax.f32 %v341_v52, 0.0  ;;  %v2065_v11 = vld [vmem:[%s2481_s5] sm:$0xff]  }
  0xdd   :  { %v272_v5 = vadd.f32 %v2222_v27, %v271_v4  ;;  %v374_v7 = vmax.f32 %v280_v1, 0.0  ;;  %v1950_v19 = vpop.f32.mrf.mxu1  ;;  %2001 = vmatprep.subr.bf16.mxu0 %v2065_v11 }
  0xde   :  { %v1937_v8 = vpop.f32.mrf.mxu0  ;;  %v387_v54 = vmax.f32 %v333_v49, 0.0  ;;  %v344_v61 = vadd.f32 %v1950_v19, %v2222_v27  ;;  %2002 = vmatpush3.bf16.msra.mxu0 %v2065_v11 }
  0xdf   :  { %v372_v10 = vmax.f32 %v272_v5, 0.0  ;;  %v400_v17 = vpack.c.bf16 %v374_v7, %v373_v12  ;;  %v293_v22 = vadd.f32 %v1937_v8, %v2222_v27  ;;  %v335_v29 = vpop.f32.mrf.mxu1 }
  0xe0   :  { %v284_v13 = vpop.f32.mrf.mxu0  ;;  %v336_v34 = vadd.f32 %v2222_v27, %v335_v29  ;;  %v390_v3 = vmax.f32 %v344_v61, 0.0 }
  0xe1   :  { %v399_v14 = vpack.c.bf16 %v372_v10, %v371_v9  ;;  %v285_v20 = vadd.f32 %v2222_v27, %v284_v13  ;;  %v377_v32 = vmax.f32 %v293_v22, 0.0  ;;  %v1953_v41 = vpop.f32.mrf.mxu1 }
  0xe2   :  { %v1938_v18 = vpop.f32.mrf.mxu0  ;;  %v388_v55 = vmax.f32 %v336_v34, 0.0  ;;  %v408_v5 = vpack.c.bf16 %v390_v3, %v389_v2  ;;  %v357_v7 = vadd.f32 %v1953_v41, %v2222_v27 }
  0xe3   :  { %v296_v21 = vadd.f32 %v1938_v18, %v2222_v27  ;;  %1971 = vmatprep.mubr.msk.bf16.mxu1 %vm450_vm2, %v399_v14  ;;  %v375_v30 = vmax.f32 %v285_v20, 0.0  ;;  %v348_v47 = vpop.f32.mrf.mxu1 }
  0xe4   :  { %v287_v23 = vpop.f32.mrf.mxu0  ;;  %1972 = vmatmul.mubr.msk.bf16.gmra.mxu1 %vm450_vm2, %v400_v17  ;;  %v407_v59 = vpack.c.bf16 %v388_v55, %v387_v54  ;;  %v349_v60 = vadd.f32 %v2222_v27, %v348_v47  ;;  %v393_v6 = vmax.f32 %v357_v7, 0.0 }
  0xe5   :  { %v288_v25 = vadd.f32 %v2222_v27, %v287_v23  ;;  %v378_v28 = vmax.f32 %v296_v21, 0.0  ;;  %v1954_v53 = vpop.f32.mrf.mxu1 }
  0xe6   :  { %v391_v0 = vmax.f32 %v349_v60, 0.0  ;;  %v360_v8 = vadd.f32 %v1954_v53, %v2222_v27 }
  0xe7   :  { %v376_v31 = vmax.f32 %v288_v25, 0.0  ;;  %v402_v39 = vpack.c.bf16 %v378_v28, %v377_v32  ;;  %v351_v58 = vpop.f32.mrf.mxu1 }
  0xe8   :  { %v352_v62 = vadd.f32 %v2222_v27, %v351_v58  ;;  %v394_v9 = vmax.f32 %v360_v8, 0.0  ;;  %v2287_v27 = vld [vmem:[%s2480_s4] ss:$0 sm:$0xff] }
  0xe9   :  { %v401_v33 = vpack.c.bf16 %v376_v31, %v375_v30 }
  0xea   :  { %v392_v1 = vmax.f32 %v352_v62, 0.0  ;;  %v410_v10 = vpack.c.bf16 %v394_v9, %v393_v6 }
  0xeb   :  { %1975 = vmatprep.mubr.msk.bf16.mxu1 %vm450_vm2, %v401_v33 }
  0xec   :  { %1976 = vmatmul.mubr.msk.bf16.gmra.mxu1 %vm450_vm2, %v402_v39  ;;  %v409_v4 = vpack.c.bf16 %v392_v1, %v391_v0 }
  0xed   :  { %1979 = vmatprep.mubr.msk.bf16.mxu1 %vm450_vm2, %v403_v35 }
  0xf4   :  { %1980 = vmatmul.mubr.msk.bf16.gmra.mxu1 %vm450_vm2, %v404_v50 }
  0xf5   :  { %1983 = vmatprep.mubr.msk.bf16.mxu1 %vm450_vm2, %v405_v48 }
  0xfc   :  { %1984 = vmatmul.mubr.msk.bf16.gmra.mxu1 %vm450_vm2, %v406_v63 }
  0xfd   :  { %1987 = vmatprep.mubr.msk.bf16.mxu1 %vm450_vm2, %v407_v59 }
 0x104   :  { %1988 = vmatmul.mubr.msk.bf16.gmra.mxu1 %vm450_vm2, %v408_v5 }
 0x105   :  { %1991 = vmatprep.mubr.msk.bf16.mxu1 %vm450_vm2, %v409_v4 }
 0x10c   :  { %1992 = vmatmul.mubr.msk.bf16.gmra.mxu1 %vm450_vm2, %v410_v10 }
 0x194   :  { %v1965_v12 = vpop.f32.mrf.mxu1 }
 0x195   :  { %v542_v17 = vadd.f32 %v1965_v12, %v2287_v27 }
 0x196   :  { %v533_v13 = vpop.f32.mrf.mxu1 }
 0x197   :  { %v534_v15 = vadd.f32 %v2287_v27, %v533_v13  ;;  %v662_v24 = vmax.f32 %v542_v17, 0.0 }
 0x198   :  { %v1966_v14 = vpop.f32.mrf.mxu1 }
 0x199   :  { %v545_v16 = vadd.f32 %v1966_v14, %v2287_v27  ;;  %v660_v22 = vmax.f32 %v534_v15, 0.0 }
 0x19a   :  { %v536_v18 = vpop.f32.mrf.mxu1 }
 0x19b   :  { %v537_v19 = vadd.f32 %v2287_v27, %v536_v18  ;;  %v663_v20 = vmax.f32 %v545_v16, 0.0 }
 0x19c   :  { %v1969_v21 = vpop.f32.mrf.mxu1 }
 0x19d   :  { %v661_v23 = vmax.f32 %v537_v19, 0.0  ;;  %v693_v28 = vpack.c.bf16 %v663_v20, %v662_v24  ;;  %v558_v32 = vadd.f32 %v1969_v21, %v2287_v27 }
 0x19e   :  { %v549_v25 = vpop.f32.mrf.mxu1 }
 0x19f   :  { %v692_v26 = vpack.c.bf16 %v661_v23, %v660_v22  ;;  %v550_v30 = vadd.f32 %v2287_v27, %v549_v25  ;;  %v666_v40 = vmax.f32 %v558_v32, 0.0 }
 0x1a0   :  { %v1970_v29 = vpop.f32.mrf.mxu1 }
 0x1a1   :  { %v561_v31 = vadd.f32 %v1970_v29, %v2287_v27  ;;  %2003 = vmatprep.mubr.msk.bf16.mxu0 %vm450_vm2, %v692_v26  ;;  %v664_v38 = vmax.f32 %v550_v30, 0.0 }
 0x1a2   :  { %v552_v33 = vpop.f32.mrf.mxu1  ;;  %2004 = vmatmul.mubr.msk.bf16.vlgmr.msra.gmra.mxu0 %vm450_vm2, %v693_v28 }
 0x1a3   :  { %v553_v35 = vadd.f32 %v2287_v27, %v552_v33  ;;  %v667_v36 = vmax.f32 %v561_v31, 0.0 }
 0x1a4   :  { %v1973_v37 = vpop.f32.mrf.mxu1 }
 0x1a5   :  { %v665_v39 = vmax.f32 %v553_v35, 0.0  ;;  %v695_v44 = vpack.c.bf16 %v667_v36, %v666_v40  ;;  %v574_v48 = vadd.f32 %v1973_v37, %v2287_v27 }
 0x1a6   :  { %v565_v41 = vpop.f32.mrf.mxu1 }
 0x1a7   :  { %v694_v42 = vpack.c.bf16 %v665_v39, %v664_v38  ;;  %v566_v46 = vadd.f32 %v2287_v27, %v565_v41  ;;  %v670_v54 = vmax.f32 %v574_v48, 0.0 }
 0x1a8   :  { %v1974_v45 = vpop.f32.mrf.mxu1 }
 0x1a9   :  { %v577_v47 = vadd.f32 %v1974_v45, %v2287_v27  ;;  %2007 = vmatprep.mubr.msk.bf16.mxu0 %vm450_vm2, %v694_v42  ;;  %v668_v51 = vmax.f32 %v566_v46, 0.0 }
 0x1aa   :  { %v568_v49 = vpop.f32.mrf.mxu1  ;;  %2008 = vmatmul.mubr.msk.bf16.gmra.mxu0 %vm450_vm2, %v695_v44 }
 0x1ab   :  { %v569_v34 = vadd.f32 %v2287_v27, %v568_v49  ;;  %v671_v50 = vmax.f32 %v577_v47, 0.0 }
 0x1ac   :  { %v1977_v43 = vpop.f32.mrf.mxu1 }
 0x1ad   :  { %v669_v53 = vmax.f32 %v569_v34, 0.0  ;;  %v697_v57 = vpack.c.bf16 %v671_v50, %v670_v54  ;;  %v590_v62 = vadd.f32 %v1977_v43, %v2287_v27 }
 0x1ae   :  { %v581_v55 = vpop.f32.mrf.mxu1 }
 0x1af   :  { %v696_v56 = vpack.c.bf16 %v669_v53, %v668_v51  ;;  %v582_v59 = vadd.f32 %v2287_v27, %v581_v55  ;;  %v674_v3 = vmax.f32 %v590_v62, 0.0 }
 0x1b0   :  { %v1978_v58 = vpop.f32.mrf.mxu1 }
 0x1b1   :  { %v593_v60 = vadd.f32 %v1978_v58, %v2287_v27  ;;  %2011 = vmatprep.mubr.msk.bf16.mxu0 %vm450_vm2, %v696_v56  ;;  %v672_v1 = vmax.f32 %v582_v59, 0.0 }
 0x1b2   :  { %v584_v63 = vpop.f32.mrf.mxu1  ;;  %2012 = vmatmul.mubr.msk.bf16.gmra.mxu0 %vm450_vm2, %v697_v57 }
 0x1b3   :  { %v585_v52 = vadd.f32 %v2287_v27, %v584_v63  ;;  %v675_v61 = vmax.f32 %v593_v60, 0.0 }
 0x1b4   :  { %v1981_v0 = vpop.f32.mrf.mxu1 }
 0x1b5   :  { %v673_v2 = vmax.f32 %v585_v52, 0.0  ;;  %v699_v7 = vpack.c.bf16 %v675_v61, %v674_v3  ;;  %v606_v10 = vadd.f32 %v1981_v0, %v2287_v27  ;;  %v2340_v52 = vld [vmem:[%s2482_s6] ss:$0 sm:$0xff]  ;;  %s2088_s6 = smov [#allocation2]  }
 0x1b6   :  { %v597_v4 = vpop.f32.mrf.mxu1  ;;  %s1682_s27 = sshll.u32 %s2088_s6, 4  ;;  %s1683_s27 = int_to_ptr.vmem [resolvable:$true] %s1682_s27 }
 0x1b7   :  { %v698_v5 = vpack.c.bf16 %v673_v2, %v672_v1  ;;  %v598_v6 = vadd.f32 %v2287_v27, %v597_v4  ;;  %v678_v17 = vmax.f32 %v606_v10, 0.0  ;;  %s2066_s28 = scalar_lea.vmem %s1683_s27, 256  ;;  %p2071_p1 = scmp.lt.s32.totalorder %s1683_s27, %s1683_s27 }
 0x1b8   :  { %v1982_v8 = vpop.f32.mrf.mxu1  ;;  %p2067_p0 = scmp.ne.s32.totalorder %s1683_s27, %s2066_s28  ;;  %p2072_p2 = scmp.lt.s32.totalorder %s2066_s28, %s2066_s28 }
 0x1b9   :  { %v609_v9 = vadd.f32 %v1982_v8, %v2287_v27  ;;  %2015 = vmatprep.mubr.msk.bf16.mxu0 %vm450_vm2, %v698_v5  ;;  %v676_v15 = vmax.f32 %v598_v6, 0.0 }
 0x1ba   :  { %v600_v11 = vpop.f32.mrf.mxu1  ;;  %2016 = vmatmul.mubr.msk.bf16.gmra.mxu0 %vm450_vm2, %v699_v7  ;;  %p2073_p3 = por %p2072_p2, %p2071_p1 }
 0x1bb   :  { %v601_v12 = vadd.f32 %v2287_v27, %v600_v11  ;;  %v679_v13 = vmax.f32 %v609_v9, 0.0 }
 0x1bc   :  { %v1985_v14 = vpop.f32.mrf.mxu1  ;;  %p2074_p4 = pnand %p2073_p3, %p2067_p0 }
 0x1bd   :  { %v677_v16 = vmax.f32 %v601_v12, 0.0  ;;  %v701_v20 = vpack.c.bf16 %v679_v13, %v678_v17  ;;  %v622_v24 = vadd.f32 %v1985_v14, %v2287_v27 }
 0x1be   :  { %v613_v18 = vpop.f32.mrf.mxu1 }
 0x1bf   :  { %v700_v19 = vpack.c.bf16 %v677_v16, %v676_v15  ;;  %v614_v22 = vadd.f32 %v2287_v27, %v613_v18  ;;  %v682_v32 = vmax.f32 %v622_v24, 0.0 }
 0x1c0   :  { %v1986_v21 = vpop.f32.mrf.mxu1 }
 0x1c1   :  { %v625_v23 = vadd.f32 %v1986_v21, %v2287_v27  ;;  %2019 = vmatprep.mubr.msk.bf16.mxu0 %vm450_vm2, %v700_v19  ;;  %v680_v30 = vmax.f32 %v614_v22, 0.0 }
 0x1c2   :  { %v616_v25 = vpop.f32.mrf.mxu1  ;;  %2020 = vmatmul.mubr.msk.bf16.gmra.mxu0 %vm450_vm2, %v701_v20 }
 0x1c3   :  { %v617_v26 = vadd.f32 %v2287_v27, %v616_v25  ;;  %v683_v28 = vmax.f32 %v625_v23, 0.0 }
 0x1c4   :  { %v1989_v29 = vpop.f32.mrf.mxu1 }
 0x1c5   :  { %v681_v31 = vmax.f32 %v617_v26, 0.0  ;;  %v703_v36 = vpack.c.bf16 %v683_v28, %v682_v32  ;;  %v638_v40 = vadd.f32 %v1989_v29, %v2287_v27 }
 0x1c6   :  { %v629_v33 = vpop.f32.mrf.mxu1 }
 0x1c7   :  { %v702_v35 = vpack.c.bf16 %v681_v31, %v680_v30  ;;  %v630_v38 = vadd.f32 %v2287_v27, %v629_v33  ;;  %v686_v48 = vmax.f32 %v638_v40, 0.0 }
 0x1c8   :  { %v1990_v37 = vpop.f32.mrf.mxu1 }
 0x1c9   :  { %v641_v39 = vadd.f32 %v1990_v37, %v2287_v27  ;;  %2023 = vmatprep.mubr.msk.bf16.mxu0 %vm450_vm2, %v702_v35  ;;  %v684_v46 = vmax.f32 %v630_v38, 0.0 }
 0x1ca   :  { %v632_v41 = vpop.f32.mrf.mxu1  ;;  %2024 = vmatmul.mubr.msk.bf16.gmra.mxu0 %vm450_vm2, %v703_v36 }
 0x1cb   :  { %v633_v42 = vadd.f32 %v2287_v27, %v632_v41  ;;  %v687_v44 = vmax.f32 %v641_v39, 0.0 }
 0x1cc   :  { %v1993_v45 = vpop.f32.mrf.mxu1 }
 0x1cd   :  { %v685_v47 = vmax.f32 %v633_v42, 0.0  ;;  %v705_v50 = vpack.c.bf16 %v687_v44, %v686_v48  ;;  %v654_v54 = vadd.f32 %v1993_v45, %v2287_v27 }
 0x1ce   :  { %v645_v49 = vpop.f32.mrf.mxu1 }
 0x1cf   :  { %v704_v34 = vpack.c.bf16 %v685_v47, %v684_v46  ;;  %v646_v51 = vadd.f32 %v2287_v27, %v645_v49  ;;  %v690_v60 = vmax.f32 %v654_v54, 0.0 }
 0x1d0   :  { %v1994_v43 = vpop.f32.mrf.mxu1 }
 0x1d1   :  { %v657_v53 = vadd.f32 %v1994_v43, %v2287_v27  ;;  %2027 = vmatprep.mubr.msk.bf16.mxu0 %vm450_vm2, %v704_v34  ;;  %v688_v58 = vmax.f32 %v646_v51, 0.0 }
 0x1d2   :  { %v648_v55 = vpop.f32.mrf.mxu1  ;;  %2028 = vmatmul.mubr.msk.bf16.gmra.mxu0 %vm450_vm2, %v705_v50 }
 0x1d3   :  { %v649_v56 = vadd.f32 %v2287_v27, %v648_v55  ;;  %v691_v57 = vmax.f32 %v657_v53, 0.0 }
 0x1d5   :  { %v689_v59 = vmax.f32 %v649_v56, 0.0  ;;  %v707_v63 = vpack.c.bf16 %v691_v57, %v690_v60 }
 0x1d7   :  { %v706_v62 = vpack.c.bf16 %v689_v59, %v688_v58 }
 0x1d9   :  { %2031 = vmatprep.mubr.msk.bf16.mxu0 %vm450_vm2, %v706_v62 }
 0x1da   :  { %2032 = vmatmul.mubr.msk.bf16.gmra.mxu0 %vm450_vm2, %v707_v63 }
 0x262   :  { %v2005_v61 = vpop.f32.mrf.mxu0 }
 0x263   :  { %v838_v0 = vadd.f32 %v2005_v61, %v2340_v52 }
 0x264   :  { %v829_v1 = vpop.f32.mrf.mxu0 }
 0x265   :  { %v958_v27 = vmax.f32 %v838_v0, 0.0  ;;  %v830_v2 = vadd.f32 %v2340_v52, %v829_v1 }
 0x266   :  { %v2006_v3 = vpop.f32.mrf.mxu0 }
 0x267   :  { %v1834_v4 = vpack.c.bf16 %v958_v27, %v958_v27  ;;  %v956_v5 = vmax.f32 %v830_v2, 0.0  ;;  %v841_v7 = vadd.f32 %v2006_v3, %v2340_v52 }
 0x268   :  { %v832_v8 = vpop.f32.mrf.mxu0 }
 0x269   :  { %v1113_v6 = vsel %vm1084_vm3, %v1834_v4, 4286644096  ;;  %v1832_v9 = vpack.c.bf16 %v956_v5, %v956_v5  ;;  %v959_v10 = vmax.f32 %v841_v7, 0.0  ;;  %v833_v11 = vadd.f32 %v2340_v52, %v832_v8 }
 0x26a   :  { %v1115_v12 = vunpack.i.l.bf16 %v1113_v6  ;;  %v1116_v13 = vunpack.i.h.bf16 %v1113_v6  ;;  %v2009_v14 = vpop.f32.mrf.mxu0 }
 0x26b   :  { %v1087_v15 = vsel %vm1084_vm3, %v1832_v9, 4286644096  ;;  %v1835_v16 = vpack.c.bf16 %v959_v10, %v959_v10  ;;  %v957_v17 = vmax.f32 %v833_v11, 0.0  ;;  %v854_v18 = vadd.f32 %v2009_v14, %v2340_v52 }
 0x26c   :  { %v1117_v19 = vmax.f32 %v1115_v12, %v1116_v13  ;;  %v1089_v20 = vunpack.i.l.bf16 %v1087_v15  ;;  %v1090_v21 = vunpack.i.h.bf16 %v1087_v15  ;;  %v845_v22 = vpop.f32.mrf.mxu0 }
 0x26d   :  { %v1126_v23 = vsel %vm1084_vm3, %v1835_v16, 4286644096  ;;  %v1833_v24 = vpack.c.bf16 %v957_v17, %v957_v17  ;;  %v962_v25 = vmax.f32 %v854_v18, 0.0  ;;  %v846_v26 = vadd.f32 %v2340_v52, %v845_v22 }
 0x26e   :  { %v1118_v28 = vrot.slane %v1117_v19, 4  ;;  %v1091_v29 = vmax.f32 %v1089_v20, %v1090_v21  ;;  %v1128_v30 = vunpack.i.l.bf16 %v1126_v23  ;;  %v1129_v31 = vunpack.i.h.bf16 %v1126_v23  ;;  %v2010_v32 = vpop.f32.mrf.mxu0 }
 0x26f   :  { %v1100_v33 = vsel %vm1084_vm3, %v1833_v24, 4286644096  ;;  %v1838_v35 = vpack.c.bf16 %v962_v25, %v962_v25  ;;  %v960_v36 = vmax.f32 %v846_v26, 0.0  ;;  %v857_v37 = vadd.f32 %v2010_v32, %v2340_v52 }
 0x270   :  { %v1119_v38 = vmax.f32 %v1117_v19, %v1118_v28  ;;  %v1092_v39 = vrot.slane %v1091_v29, 4  ;;  %v1130_v40 = vmax.f32 %v1128_v30, %v1129_v31  ;;  %v1102_v41 = vunpack.i.l.bf16 %v1100_v33  ;;  %v848_v42 = vpop.f32.mrf.mxu0 }
 0x271   :  { %v1103_v44 = vunpack.i.h.bf16 %v1100_v33  ;;  %v1165_v45 = vsel %vm1084_vm3, %v1838_v35, 4286644096  ;;  %v1836_v46 = vpack.c.bf16 %v960_v36, %v960_v36  ;;  %v963_v47 = vmax.f32 %v857_v37, 0.0 }
 0x272   :  { %v1120_v48 = vrot.slane %v1119_v38, 2  ;;  %v1093_v49 = vmax.f32 %v1091_v29, %v1092_v39  ;;  %v1131_v34 = vrot.slane %v1130_v40, 4  ;;  %v1167_v50 = vunpack.i.l.bf16 %v1165_v45  ;;  %v2013_v55 = vpop.f32.mrf.mxu0 }
 0x273   :  { %v1104_v43 = vmax.f32 %v1102_v41, %v1103_v44  ;;  %v1168_v51 = vunpack.i.h.bf16 %v1165_v45  ;;  %v1139_v53 = vsel %vm1084_vm3, %v1836_v46, 4286644096  ;;  %v1839_v54 = vpack.c.bf16 %v963_v47, %v963_v47 }
 0x274   :  { %v1121_v56 = vmax.f32 %v1119_v38, %v1120_v48  ;;  %v1094_v57 = vrot.slane %v1093_v49, 2  ;;  %v1132_v58 = vmax.f32 %v1130_v40, %v1131_v34  ;;  %v1141_v59 = vunpack.i.l.bf16 %v1139_v53  ;;  %v861_v8 = vpop.f32.mrf.mxu0 }
 0x275   :  { %v1105_v60 = vrot.slane %v1104_v43, 4  ;;  %v1169_v62 = vmax.f32 %v1167_v50, %v1168_v51  ;;  %v1142_v63 = vunpack.i.h.bf16 %v1139_v53  ;;  %v1178_v61 = vsel %vm1084_vm3, %v1839_v54, 4286644096 }
 0x276   :  { %v1122_v0 = vrot.slane %v1121_v56, 1  ;;  %v1095_v1 = vmax.f32 %v1093_v49, %v1094_v57  ;;  %v1133_v27 = vrot.slane %v1132_v58, 2  ;;  %v1180_v2 = vunpack.i.l.bf16 %v1178_v61  ;;  %v2014_v22 = vpop.f32.mrf.mxu0 }
 0x277   :  { %v1106_v3 = vmax.f32 %v1104_v43, %v1105_v60  ;;  %v1170_v4 = vrot.slane %v1169_v62, 4  ;;  %v1143_v5 = vmax.f32 %v1141_v59, %v1142_v63  ;;  %v1181_v7 = vunpack.i.h.bf16 %v1178_v61 }
 0x278   :  { %v1096_v6 = vrot.slane %v1095_v1, 1  ;;  %v1134_v9 = vmax.f32 %v1132_v58, %v1133_v27  ;;  %v849_v10 = vadd.f32 %v2340_v52, %v848_v42  ;;  %v1123_v15 = vmax.f32 %v1121_v56, %v1122_v0  ;;  %v864_v37 = vpop.f32.mrf.mxu0 }
 0x279   :  { %v1107_v11 = vrot.slane %v1106_v3, 2  ;;  %v1171_v12 = vmax.f32 %v1169_v62, %v1170_v4  ;;  %v1144_v13 = vrot.slane %v1143_v5, 4  ;;  %v1182_v14 = vmax.f32 %v1180_v2, %v1181_v7 }
 0x27a   :  { %v1135_v16 = vrot.slane %v1134_v9, 1  ;;  %v961_v17 = vmax.f32 %v849_v10, 0.0  ;;  %v1097_v23 = vmax.f32 %v1095_v1, %v1096_v6  ;;  %v1124_v32 = vpack.i.bf16 %v1123_v15, %v1123_v15  ;;  %v2017_v50 = vpop.f32.mrf.mxu0 }
 0x27b   :  { %v1108_v18 = vmax.f32 %v1106_v3, %v1107_v11  ;;  %v1172_v19 = vrot.slane %v1171_v12, 2  ;;  %v1145_v20 = vmax.f32 %v1143_v5, %v1144_v13  ;;  %v1183_v21 = vrot.slane %v1182_v14, 4 }
 0x27c   :  { %v1136_v24 = vmax.f32 %v1134_v9, %v1135_v16  ;;  %v1837_v25 = vpack.c.bf16 %v961_v17, %v961_v17  ;;  %v1098_v40 = vpack.i.bf16 %v1097_v23, %v1097_v23  ;;  %v870_v46 = vadd.f32 %v2013_v55, %v2340_v52  ;;  %v877_v1 = vpop.f32.mrf.mxu0 }
 0x27d   :  { %v1109_v26 = vrot.slane %v1108_v18, 1  ;;  %v1173_v28 = vmax.f32 %v1171_v12, %v1172_v19  ;;  %v1146_v29 = vrot.slane %v1145_v20, 2  ;;  %v1184_v30 = vmax.f32 %v1182_v14, %v1183_v21 }
 0x27e   :  { %v1152_v31 = vsel %vm1084_vm3, %v1837_v25, 4286644096  ;;  %v1137_v41 = vpack.i.bf16 %v1136_v24, %v1136_v24  ;;  %v862_v47 = vadd.f32 %v2340_v52, %v861_v8  ;;  %v1802_v48 = vcombine.low %v1124_v32, %v1124_v32  ;;  %v2018_v17 = vpop.f32.mrf.mxu0 }
 0x27f   :  { %v1110_v33 = vmax.f32 %v1108_v18, %v1109_v26  ;;  %v1174_v35 = vrot.slane %v1173_v28, 1  ;;  %v1147_v36 = vmax.f32 %v1145_v20, %v1146_v29  ;;  %v1154_v38 = vunpack.i.l.bf16 %v1152_v31 }
 0x280   :  { %v1155_v39 = vunpack.i.h.bf16 %v1152_v31  ;;  %v1185_v42 = vrot.slane %v1184_v30, 2  ;;  %v966_v51 = vmax.f32 %v870_v46, 0.0  ;;  %v964_v53 = vmax.f32 %v862_v47, 0.0 }
 0x281   :  { %v1111_v44 = vpack.i.bf16 %v1110_v33, %v1110_v33  ;;  %v1175_v49 = vmax.f32 %v1173_v28, %v1174_v35  ;;  %v1148_v34 = vrot.slane %v1147_v36, 1  ;;  %v873_v54 = vadd.f32 %v2014_v22, %v2340_v52 }
 0x282   :  { %v1156_v45 = vmax.f32 %v1154_v38, %v1155_v39  ;;  %v1800_v56 = vcombine.low %v1098_v40, %v1098_v40  ;;  %v1803_v57 = vcombine.low %v1137_v41, %v1137_v41  ;;  %v1186_v58 = vmax.f32 %v1184_v30, %v1185_v42 }
 0x283   :  { %v1801_v59 = vcombine.low %v1111_v44, %v1111_v44  ;;  %v1842_v62 = vpack.c.bf16 %v966_v51, %v966_v51  ;;  %v1840_v63 = vpack.c.bf16 %v964_v53, %v964_v53  ;;  %v1176_v55 = vpack.i.bf16 %v1175_v49, %v1175_v49  ;;  %v880_v51 = vpop.f32.mrf.mxu0 }
 0x284   :  { %v1157_v43 = vrot.slane %v1156_v45, 4  ;;  %v1149_v61 = vmax.f32 %v1147_v36, %v1148_v34  ;;  %v967_v0 = vmax.f32 %v873_v54, 0.0  ;;  %v2361_v27 = vunpack.c.l.b16 %v1802_v48 }
 0x285   :  { %v1217_v3 = vsel %vm1084_vm3, %v1842_v62, 4286644096  ;;  %v1191_v4 = vsel %vm1084_vm3, %v1840_v63, 4286644096  ;;  %v1598_v5 = vunpack.c.l.b16 %v1800_v56  ;;  %v2365_v7 = vunpack.c.l.b16 %v1803_v57 }
 0x286   :  { %v1158_v60 = vmax.f32 %v1156_v45, %v1157_v43  ;;  %v1187_v8 = vrot.slane %v1186_v58, 1  ;;  %v1219_v6 = vunpack.i.l.bf16 %v1217_v3  ;;  %v1599_v9 = vunpack.c.l.b16 %v1801_v59 }
 0x287   :  { %v1220_v10 = vunpack.i.h.bf16 %v1217_v3  ;;  %v1193_v11 = vunpack.i.l.bf16 %v1191_v4  ;;  %v1194_v12 = vunpack.i.h.bf16 %v1191_v4  ;;  %v1806_v13 = vcombine.low %v1176_v55, %v1176_v55 }
 0x288   :  { %v1159_v2 = vrot.slane %v1158_v60, 2  ;;  %v2367_v14 = vpack.i.bf16 %v1149_v61, %v1149_v61  ;;  %v1843_v15 = vpack.c.bf16 %v967_v0, %v967_v0  ;;  %v865_v16 = vadd.f32 %v2340_v52, %v864_v37 }
 0x289   :  { %v1221_v19 = vmax.f32 %v1219_v6, %v1220_v10  ;;  %v1195_v20 = vmax.f32 %v1193_v11, %v1194_v12  ;;  %v886_v21 = vadd.f32 %v2017_v50, %v2340_v52  ;;  %v1188_v22 = vmax.f32 %v1186_v58, %v1187_v8 }
 0x28a   :  { %v1160_v18 = vmax.f32 %v1158_v60, %v1159_v2  ;;  %v1230_v23 = vsel %vm1084_vm3, %v1843_v15, 4286644096  ;;  %v965_v24 = vmax.f32 %v865_v16, 0.0  ;;  %v878_v25 = vadd.f32 %v2340_v52, %v877_v1 }
 0x28b   :  { %v1222_v26 = vrot.slane %v1221_v19, 4  ;;  %v1196_v28 = vrot.slane %v1195_v20, 4  ;;  %v1232_v29 = vunpack.i.l.bf16 %v1230_v23  ;;  %v889_v30 = vadd.f32 %v2018_v17, %v2340_v52 }
 0x28c   :  { %v1233_v31 = vunpack.i.h.bf16 %v1230_v23  ;;  %v1841_v32 = vpack.c.bf16 %v965_v24, %v965_v24  ;;  %v970_v33 = vmax.f32 %v886_v21, 0.0  ;;  %v968_v35 = vmax.f32 %v878_v25, 0.0 }
 0x28d   :  { %v1631_v36 = vsel %vm1630_vm4, %v1599_v9, %v1598_v5  ;;  %v1161_v37 = vrot.slane %v1160_v18, 1  ;;  %v1223_v38 = vmax.f32 %v1221_v19, %v1222_v26  ;;  %v1197_v39 = vmax.f32 %v1195_v20, %v1196_v28  ;;  %v2021_v5 = vpop.f32.mrf.mxu0 }
 0x28e   :  { %v1234_v40 = vmax.f32 %v1232_v29, %v1233_v31  ;;  %v1204_v41 = vsel %vm1084_vm3, %v1841_v32, 4286644096  ;;  %v1846_v42 = vpack.c.bf16 %v970_v33, %v970_v33  ;;  %v1844_v44 = vpack.c.bf16 %v968_v35, %v968_v35 }
 0x28f   :  { %v1224_v45 = vrot.slane %v1223_v38, 2  ;;  %v1198_v46 = vrot.slane %v1197_v39, 2  ;;  %v1206_v47 = vunpack.i.l.bf16 %v1204_v41  ;;  %v971_v48 = vmax.f32 %v889_v30, 0.0  ;;  %v893_v23 = vpop.f32.mrf.mxu0 }
 0x290   :  { %v1235_v49 = vrot.slane %v1234_v40, 4  ;;  %v1207_v34 = vunpack.i.h.bf16 %v1204_v41  ;;  %v1269_v50 = vsel %vm1084_vm3, %v1846_v42, 4286644096  ;;  %v1243_v43 = vsel %vm1084_vm3, %v1844_v44, 4286644096 }
 0x291   :  { %v2378_v53 = vunpack.c.l.b16 %v1806_v13  ;;  %v1225_v54 = vmax.f32 %v1223_v38, %v1224_v45  ;;  %v1199_v56 = vmax.f32 %v1197_v39, %v1198_v46  ;;  %v1271_v57 = vunpack.i.l.bf16 %v1269_v50  ;;  %v2022_v41 = vpop.f32.mrf.mxu0 }
 0x292   :  { %v1236_v58 = vmax.f32 %v1234_v40, %v1235_v49  ;;  %v1208_v59 = vmax.f32 %v1206_v47, %v1207_v34  ;;  %v1272_v60 = vunpack.i.h.bf16 %v1269_v50  ;;  %v1245_v62 = vunpack.i.l.bf16 %v1243_v43 }
 0x293   :  { %v1804_v63 = vcombine.low %v2367_v14, %v2367_v14  ;;  %v2382_v55 = vpack.i.bf16 %v1188_v22, %v1188_v22  ;;  %v1162_v61 = vmax.f32 %v1160_v18, %v1161_v37  ;;  %v1246_v0 = vunpack.i.h.bf16 %v1243_v43 }
 0x294   :  { %v1237_v1 = vrot.slane %v1236_v58, 2  ;;  %v1209_v2 = vrot.slane %v1208_v59, 4  ;;  %v1273_v3 = vmax.f32 %v1271_v57, %v1272_v60  ;;  %v1847_v4 = vpack.c.bf16 %v971_v48, %v971_v48 }
 0x295   :  { %v1226_v8 = vrot.slane %v1225_v54, 1  ;;  %v1200_v6 = vrot.slane %v1199_v56, 1  ;;  %v1247_v9 = vmax.f32 %v1245_v62, %v1246_v0  ;;  %v881_v10 = vadd.f32 %v2340_v52, %v880_v51 }
 0x296   :  { %v1238_v11 = vmax.f32 %v1236_v58, %v1237_v1  ;;  %v1210_v12 = vmax.f32 %v1208_v59, %v1209_v2  ;;  %v1274_v13 = vrot.slane %v1273_v3, 4  ;;  %v1282_v14 = vsel %vm1084_vm3, %v1847_v4, 4286644096  ;;  %v896_v59 = vpop.f32.mrf.mxu0 }
 0x297   :  { %v1633_v15 = vsel %vm1632_vm5, %v2361_v27, %v1631_v36  ;;  %v1163_v16 = vpack.i.bf16 %v1162_v61, %v1162_v61  ;;  %v1248_v17 = vrot.slane %v1247_v9, 4  ;;  %v1284_v18 = vunpack.i.l.bf16 %v1282_v14 }
 0x298   :  { %v1239_v19 = vrot.slane %v1238_v11, 1  ;;  %v1211_v20 = vrot.slane %v1210_v12, 2  ;;  %v1275_v21 = vmax.f32 %v1273_v3, %v1274_v13  ;;  %v1285_v22 = vunpack.i.h.bf16 %v1282_v14 }
 0x299   :  { %v1602_v24 = vunpack.c.l.b16 %v1804_v63  ;;  %v1227_v25 = vmax.f32 %v1225_v54, %v1226_v8  ;;  %v1249_v26 = vmax.f32 %v1247_v9, %v1248_v17  ;;  %v969_v28 = vmax.f32 %v881_v10, 0.0 }
 0x29a   :  { %v1201_v29 = vmax.f32 %v1199_v56, %v1200_v6  ;;  %v1212_v30 = vmax.f32 %v1210_v12, %v1211_v20  ;;  %v1276_v31 = vrot.slane %v1275_v21, 2  ;;  %v1286_v32 = vmax.f32 %v1284_v18, %v1285_v22  ;;  %v2025_v12 = vpop.f32.mrf.mxu0 }
 0x29b   :  { %v1635_v33 = vsel %vm1634_vm6, %v2365_v7, %v1633_v15  ;;  %v1240_v27 = vmax.f32 %v1238_v11, %v1239_v19  ;;  %v1250_v35 = vrot.slane %v1249_v26, 2  ;;  %v1845_v36 = vpack.c.bf16 %v969_v28, %v969_v28 }
 0x29c   :  { %v1805_v37 = vcombine.low %v1163_v16, %v1163_v16  ;;  %v1213_v38 = vrot.slane %v1212_v30, 1  ;;  %v1277_v39 = vmax.f32 %v1275_v21, %v1276_v31  ;;  %v1287_v40 = vrot.slane %v1286_v32, 4 }
 0x29d   :  { %v1251_v42 = vmax.f32 %v1249_v26, %v1250_v35  ;;  %v1256_v44 = vsel %vm1084_vm3, %v1845_v36, 4286644096  ;;  %v902_v45 = vadd.f32 %v2021_v5, %v2340_v52  ;;  %v894_v46 = vadd.f32 %v2340_v52, %v893_v23 }
 0x29e   :  { %v1228_v47 = vpack.i.bf16 %v1227_v25, %v1227_v25  ;;  %v1202_v48 = vpack.i.bf16 %v1201_v29, %v1201_v29  ;;  %v1214_v49 = vmax.f32 %v1212_v30, %v1213_v38  ;;  %v1288_v7 = vmax.f32 %v1286_v32, %v1287_v40  ;;  %v909_v30 = vpop.f32.mrf.mxu0 }
 0x29f   :  { %v1241_v34 = vpack.i.bf16 %v1240_v27, %v1240_v27  ;;  %v1258_v50 = vunpack.i.l.bf16 %v1256_v44  ;;  %v1259_v43 = vunpack.i.h.bf16 %v1256_v44  ;;  %v974_v51 = vmax.f32 %v902_v45, 0.0 }
 0x2a0   :  { %v1637_v54 = vsel %vm1636_vm7, %v1602_v24, %v1635_v33  ;;  %v1807_v56 = vcombine.low %v2382_v55, %v2382_v55  ;;  %v1278_v57 = vrot.slane %v1277_v39, 1  ;;  %v1252_v58 = vrot.slane %v1251_v42, 1 }
 0x2a1   :  { %v1215_v60 = vpack.i.bf16 %v1214_v49, %v1214_v49  ;;  %v1260_v62 = vmax.f32 %v1258_v50, %v1259_v43  ;;  %v1850_v63 = vpack.c.bf16 %v974_v51, %v974_v51  ;;  %v972_v61 = vmax.f32 %v894_v46, 0.0 }
 0x2a2   :  { %v1603_v0 = vunpack.c.l.b16 %v1805_v37  ;;  %v1810_v1 = vcombine.low %v1228_v47, %v1228_v47  ;;  %v1808_v2 = vcombine.low %v1202_v48, %v1202_v48  ;;  %v1289_v3 = vrot.slane %v1288_v7, 2 }
 0x2a3   :  { %v1811_v4 = vcombine.low %v1241_v34, %v1241_v34  ;;  %v1261_v5 = vrot.slane %v1260_v62, 4  ;;  %v1321_v8 = vsel %vm1084_vm3, %v1850_v63, 4286644096  ;;  %v1848_v6 = vpack.c.bf16 %v972_v61, %v972_v61 }
 0x2a4   :  { %v1279_v9 = vmax.f32 %v1277_v39, %v1278_v57  ;;  %v1253_v10 = vmax.f32 %v1251_v42, %v1252_v58  ;;  %v1323_v11 = vunpack.i.l.bf16 %v1321_v8  ;;  %v905_v55 = vadd.f32 %v2022_v41, %v2340_v52 }
 0x2a5   :  { %v1809_v13 = vcombine.low %v1215_v60, %v1215_v60  ;;  %v1262_v14 = vmax.f32 %v1260_v62, %v1261_v5  ;;  %v1324_v15 = vunpack.i.h.bf16 %v1321_v8  ;;  %v1295_v16 = vsel %vm1084_vm3, %v1848_v6, 4286644096  ;;  %v2026_v60 = vpop.f32.mrf.mxu0 }
 0x2a6   :  { %v2399_v17 = vunpack.c.l.b16 %v1807_v56  ;;  %v2402_v18 = vsel %vm1638_vm8, %v1603_v0, %v1637_v54  ;;  %v1290_v19 = vmax.f32 %v1288_v7, %v1289_v3  ;;  %v1297_v20 = vunpack.i.l.bf16 %v1295_v16 }
 0x2a7   :  { %v1608_v21 = vunpack.c.l.b16 %v1810_v1  ;;  %v1606_v22 = vunpack.c.l.b16 %v1808_v2  ;;  %v1263_v23 = vrot.slane %v1262_v14, 2  ;;  %v1325_v24 = vmax.f32 %v1323_v11, %v1324_v15 }
 0x2a8   :  { %v1609_v25 = vunpack.c.l.b16 %v1811_v4  ;;  %v1280_v26 = vpack.i.bf16 %v1279_v9, %v1279_v9  ;;  %v1298_v28 = vunpack.i.h.bf16 %v1295_v16  ;;  %v975_v29 = vmax.f32 %v905_v55, 0.0 }
 0x2a9   :  { %v1607_v31 = vunpack.c.l.b16 %v1809_v13  ;;  %v1254_v32 = vpack.i.bf16 %v1253_v10, %v1253_v10  ;;  %v1326_v33 = vrot.slane %v1325_v24, 4  ;;  %v897_v27 = vadd.f32 %v2340_v52, %v896_v59  ;;  %v912_v13 = vpop.f32.mrf.mxu0 }
 0x2aa   :  { %v1291_v35 = vrot.slane %v1290_v19, 1  ;;  %v1299_v36 = vmax.f32 %v1297_v20, %v1298_v28  ;;  %v1851_v37 = vpack.c.bf16 %v975_v29, %v975_v29  ;;  %v918_v38 = vadd.f32 %v2025_v12, %v2340_v52 }
 0x2ab   :  { %v1264_v39 = vmax.f32 %v1262_v14, %v1263_v23  ;;  %v1327_v40 = vmax.f32 %v1325_v24, %v1326_v33  ;;  %v973_v41 = vmax.f32 %v897_v27, 0.0  ;;  %v910_v42 = vadd.f32 %v2340_v52, %v909_v30  ;;  %v2029_v27 = vpop.f32.mrf.mxu0 }
 0x2ac   :  { %v1814_v44 = vcombine.low %v1280_v26, %v1280_v26  ;;  %v1300_v45 = vrot.slane %v1299_v36, 4  ;;  %v1334_v46 = vsel %vm1084_vm3, %v1851_v37, 4286644096  ;;  %v978_v47 = vmax.f32 %v918_v38, 0.0 }
 0x2ad   :  { %v1644_v48 = vsel %vm1630_vm4, %v1607_v31, %v1606_v22  ;;  %v1328_v49 = vrot.slane %v1327_v40, 2  ;;  %v1336_v7 = vunpack.i.l.bf16 %v1334_v46  ;;  %v1337_v34 = vunpack.i.h.bf16 %v1334_v46 }
 0x2ae   :  { %v1301_v50 = vmax.f32 %v1299_v36, %v1300_v45  ;;  %v1849_v43 = vpack.c.bf16 %v973_v41, %v973_v41  ;;  %v1854_v51 = vpack.c.bf16 %v978_v47, %v978_v47  ;;  %v976_v54 = vmax.f32 %v910_v42, 0.0 }
 0x2af   :  { %v1812_v56 = vcombine.low %v1254_v32, %v1254_v32  ;;  %v1292_v57 = vmax.f32 %v1290_v19, %v1291_v35  ;;  %v1265_v58 = vrot.slane %v1264_v39, 1  ;;  %v1338_v59 = vmax.f32 %v1336_v7, %v1337_v34  ;;  %v925_v34 = vpop.f32.mrf.mxu0 }
 0x2b0   :  { %v1302_v62 = vrot.slane %v1301_v50, 2  ;;  %v1308_v63 = vsel %vm1084_vm3, %v1849_v43, 4286644096  ;;  %v1373_v61 = vsel %vm1084_vm3, %v1854_v51, 4286644096  ;;  %v1852_v0 = vpack.c.bf16 %v976_v54, %v976_v54 }
 0x2b1   :  { %v1645_v1 = vsel %vm1632_vm5, %v1608_v21, %v1644_v48  ;;  %v1329_v2 = vmax.f32 %v1327_v40, %v1328_v49  ;;  %v1339_v3 = vrot.slane %v1338_v59, 4  ;;  %v1310_v4 = vunpack.i.l.bf16 %v1308_v63 }
 0x2b2   :  { %v1311_v5 = vunpack.i.h.bf16 %v1308_v63  ;;  %v1375_v8 = vunpack.i.l.bf16 %v1373_v61  ;;  %v1376_v6 = vunpack.i.h.bf16 %v1373_v61  ;;  %v921_v9 = vadd.f32 %v2026_v60, %v2340_v52 }
 0x2b3   :  { %v1610_v10 = vunpack.c.l.b16 %v1812_v56  ;;  %v1266_v11 = vmax.f32 %v1264_v39, %v1265_v58  ;;  %v1340_v55 = vmax.f32 %v1338_v59, %v1339_v3  ;;  %v1347_v12 = vsel %vm1084_vm3, %v1852_v0, 4286644096 }
 0x2b4   :  { %v1303_v14 = vmax.f32 %v1301_v50, %v1302_v62  ;;  %v1312_v15 = vmax.f32 %v1310_v4, %v1311_v5  ;;  %v1377_v16 = vmax.f32 %v1375_v8, %v1376_v6  ;;  %v1349_v19 = vunpack.i.l.bf16 %v1347_v12  ;;  %v2030_v4 = vpop.f32.mrf.mxu0 }
 0x2b5   :  { %v1646_v20 = vsel %vm1634_vm6, %v1609_v25, %v1645_v1  ;;  %v1330_v21 = vrot.slane %v1329_v2, 1  ;;  %v1341_v22 = vrot.slane %v1340_v55, 2  ;;  %v1350_v23 = vunpack.i.h.bf16 %v1347_v12 }
 0x2b6   :  { %v2415_v24 = vpack.i.bf16 %v1292_v57, %v1292_v57  ;;  %v1313_v26 = vrot.slane %v1312_v15, 4  ;;  %v1378_v28 = vrot.slane %v1377_v16, 4  ;;  %v979_v29 = vmax.f32 %v921_v9, 0.0 }
 0x2b7   :  { %v2417_v30 = vunpack.c.l.b16 %v1814_v44  ;;  %v1342_v31 = vmax.f32 %v1340_v55, %v1341_v22  ;;  %v1351_v32 = vmax.f32 %v1349_v19, %v1350_v23  ;;  %v913_v33 = vadd.f32 %v2340_v52, %v912_v13  ;;  %v928_v23 = vpop.f32.mrf.mxu0 }
 0x2b8   :  { %v1267_v35 = vpack.i.bf16 %v1266_v11, %v1266_v11  ;;  %v1304_v36 = vrot.slane %v1303_v14, 1  ;;  %v1314_v37 = vmax.f32 %v1312_v15, %v1313_v26  ;;  %v1855_v38 = vpack.c.bf16 %v979_v29, %v979_v29 }
 0x2b9   :  { %v2421_v25 = vsel %vm1636_vm7, %v1610_v10, %v1646_v20  ;;  %v1331_v39 = vmax.f32 %v1329_v2, %v1330_v21  ;;  %v1352_v40 = vrot.slane %v1351_v32, 4  ;;  %v977_v41 = vmax.f32 %v913_v33, 0.0 }
 0x2ba   :  { %v1815_v42 = vcombine.low %v2415_v24, %v2415_v24  ;;  %v1315_v44 = vrot.slane %v1314_v37, 2  ;;  %v1379_v45 = vmax.f32 %v1377_v16, %v1378_v28  ;;  %v1386_v46 = vsel %vm1084_vm3, %v1855_v38, 4286644096 }
 0x2bb   :  { %v1343_v47 = vrot.slane %v1342_v31, 1  ;;  %v1353_v48 = vmax.f32 %v1351_v32, %v1352_v40  ;;  %v1388_v49 = vunpack.i.l.bf16 %v1386_v46  ;;  %v1389_v7 = vunpack.i.h.bf16 %v1386_v46 }
 0x2bc   :  { %v1813_v50 = vcombine.low %v1267_v35, %v1267_v35  ;;  %v1305_v43 = vmax.f32 %v1303_v14, %v1304_v36  ;;  %v1316_v51 = vmax.f32 %v1314_v37, %v1315_v44  ;;  %v1853_v54 = vpack.c.bf16 %v977_v41, %v977_v41 }
 0x2bd   :  { %v1332_v56 = vpack.i.bf16 %v1331_v39, %v1331_v39  ;;  %v1354_v57 = vrot.slane %v1353_v48, 2  ;;  %v1390_v58 = vmax.f32 %v1388_v49, %v1389_v7  ;;  %v934_v59 = vadd.f32 %v2029_v27, %v2340_v52 }
 0x2be   :  { %v1317_v60 = vrot.slane %v1316_v51, 1  ;;  %v1380_v62 = vrot.slane %v1379_v45, 2  ;;  %v1360_v63 = vsel %vm1084_vm3, %v1853_v54, 4286644096  ;;  %v926_v61 = vadd.f32 %v2340_v52, %v925_v34 }
 0x2bf   :  { %v1344_v0 = vmax.f32 %v1342_v31, %v1343_v47  ;;  %v1355_v1 = vmax.f32 %v1353_v48, %v1354_v57  ;;  %v1391_v2 = vrot.slane %v1390_v58, 4  ;;  %v1362_v3 = vunpack.i.l.bf16 %v1360_v63 }
 0x2c0   :  { %v1306_v5 = vpack.i.bf16 %v1305_v43, %v1305_v43  ;;  %v1318_v8 = vmax.f32 %v1316_v51, %v1317_v60  ;;  %v1363_v6 = vunpack.i.h.bf16 %v1360_v63  ;;  %v982_v9 = vmax.f32 %v934_v59, 0.0 }
 0x2c1   :  { %v1611_v10 = vunpack.c.l.b16 %v1813_v50  ;;  %v1818_v11 = vcombine.low %v1332_v56, %v1332_v56  ;;  %v1392_v55 = vmax.f32 %v1390_v58, %v1391_v2  ;;  %v980_v12 = vmax.f32 %v926_v61, 0.0 }
 0x2c2   :  { %v1319_v13 = vpack.i.bf16 %v1318_v8, %v1318_v8  ;;  %v1381_v14 = vmax.f32 %v1379_v45, %v1380_v62  ;;  %v1364_v15 = vmax.f32 %v1362_v3, %v1363_v6  ;;  %v1858_v16 = vpack.c.bf16 %v982_v9, %v982_v9  ;;  %v2033_v45 = vpop.f32.mrf.mxu0 }
 0x2c3   :  { %v1345_v19 = vpack.i.bf16 %v1344_v0, %v1344_v0  ;;  %v1356_v20 = vrot.slane %v1355_v1, 1  ;;  %v1393_v21 = vrot.slane %v1392_v55, 2  ;;  %v1856_v22 = vpack.c.bf16 %v980_v12, %v980_v12 }
 0x2c4   :  { %v1816_v24 = vcombine.low %v1306_v5, %v1306_v5  ;;  %v1365_v26 = vrot.slane %v1364_v15, 4  ;;  %v1425_v28 = vsel %vm1084_vm3, %v1858_v16, 4286644096  ;;  %v937_v29 = vadd.f32 %v2030_v4, %v2340_v52  ;;  %v941_v62 = vpop.f32.mrf.mxu0 }
 0x2c5   :  { %v1817_v31 = vcombine.low %v1319_v13, %v1319_v13  ;;  %v1394_v32 = vmax.f32 %v1392_v55, %v1393_v21  ;;  %v1427_v33 = vunpack.i.l.bf16 %v1425_v28  ;;  %v1428_v27 = vunpack.i.h.bf16 %v1425_v28 }
 0x2c6   :  { %v2431_v35 = vunpack.c.l.b16 %v1815_v42  ;;  %v1382_v36 = vrot.slane %v1381_v14, 1  ;;  %v1366_v37 = vmax.f32 %v1364_v15, %v1365_v26  ;;  %v1399_v38 = vsel %vm1084_vm3, %v1856_v22, 4286644096  ;;  %v2034_v13 = vpop.f32.mrf.mxu0 }
 0x2c7   :  { %v1819_v39 = vcombine.low %v1345_v19, %v1345_v19  ;;  %v1357_v40 = vmax.f32 %v1355_v1, %v1356_v20  ;;  %v1429_v41 = vmax.f32 %v1427_v33, %v1428_v27  ;;  %v1401_v44 = vunpack.i.l.bf16 %v1399_v38 }
 0x2c8   :  { %v2436_v46 = vsel %vm1638_vm8, %v1611_v10, %v2421_v25  ;;  %v1367_v47 = vrot.slane %v1366_v37, 2  ;;  %v1402_v48 = vunpack.i.h.bf16 %v1399_v38  ;;  %v983_v49 = vmax.f32 %v937_v29, 0.0 }
 0x2c9   :  { %v1616_v7 = vunpack.c.l.b16 %v1818_v11  ;;  %v1614_v34 = vunpack.c.l.b16 %v1816_v24  ;;  %v1615_v42 = vunpack.c.l.b16 %v1817_v31  ;;  %v1395_v50 = vrot.slane %v1394_v32, 1 }
 0x2ca   :  { %v1368_v43 = vmax.f32 %v1366_v37, %v1367_v47  ;;  %v1430_v51 = vrot.slane %v1429_v41, 4  ;;  %v1403_v54 = vmax.f32 %v1401_v44, %v1402_v48  ;;  %v1859_v56 = vpack.c.bf16 %v983_v49, %v983_v49 }
 0x2cb   :  { %v1617_v57 = vunpack.c.l.b16 %v1819_v39  ;;  %v1383_v58 = vmax.f32 %v1381_v14, %v1382_v36  ;;  %v1358_v59 = vpack.i.bf16 %v1357_v40, %v1357_v40  ;;  %v929_v60 = vadd.f32 %v2340_v52, %v928_v23 }
 0x2cc   :  { %v1369_v63 = vrot.slane %v1368_v43, 1  ;;  %v1404_v25 = vrot.slane %v1403_v54, 4  ;;  %v1438_v61 = vsel %vm1084_vm3, %v1859_v56, 4286644096  ;;  %v950_v0 = vadd.f32 %v2033_v45, %v2340_v52 }
 0x2cd   :  { %v1651_v1 = vsel %vm1630_vm4, %v1615_v42, %v1614_v34  ;;  %v1396_v2 = vmax.f32 %v1394_v32, %v1395_v50  ;;  %v1440_v3 = vunpack.i.l.bf16 %v1438_v61  ;;  %v1441_v4 = vunpack.i.h.bf16 %v1438_v61 }
 0x2ce   :  { %v1370_v5 = vmax.f32 %v1368_v43, %v1369_v63  ;;  %v1431_v8 = vmax.f32 %v1429_v41, %v1430_v51  ;;  %v981_v6 = vmax.f32 %v929_v60, 0.0  ;;  %v986_v9 = vmax.f32 %v950_v0, 0.0  ;;  %v944_v51 = vpop.f32.mrf.mxu0 }
 0x2cf   :  { %v1384_v10 = vpack.i.bf16 %v1383_v58, %v1383_v58  ;;  %v1405_v11 = vmax.f32 %v1403_v54, %v1404_v25  ;;  %v1442_v55 = vmax.f32 %v1440_v3, %v1441_v4  ;;  %v942_v12 = vadd.f32 %v2340_v52, %v941_v62 }
 0x2d0   :  { %v1820_v14 = vcombine.low %v1358_v59, %v1358_v59  ;;  %v1371_v15 = vpack.i.bf16 %v1370_v5, %v1370_v5  ;;  %v1857_v16 = vpack.c.bf16 %v981_v6, %v981_v6  ;;  %v1862_v19 = vpack.c.bf16 %v986_v9, %v986_v9 }
 0x2d1   :  { %v1652_v20 = vsel %vm1632_vm5, %v1616_v7, %v1651_v1  ;;  %v1397_v21 = vpack.i.bf16 %v1396_v2, %v1396_v2  ;;  %v1443_v22 = vrot.slane %v1442_v55, 4  ;;  %v984_v23 = vmax.f32 %v942_v12, 0.0 }
 0x2d2   :  { %v1432_v24 = vrot.slane %v1431_v8, 2  ;;  %v1412_v26 = vsel %vm1084_vm3, %v1857_v16, 4286644096  ;;  %v1477_v28 = vsel %vm1084_vm3, %v1862_v19, 4286644096  ;;  %v953_v29 = vadd.f32 %v2034_v13, %v2340_v52 }
 0x2d3   :  { %v1821_v31 = vcombine.low %v1371_v15, %v1371_v15  ;;  %v1406_v32 = vrot.slane %v1405_v11, 2  ;;  %v1414_v33 = vunpack.i.l.bf16 %v1412_v26  ;;  %v1415_v27 = vunpack.i.h.bf16 %v1412_v26 }
 0x2d4   :  { %v1822_v36 = vcombine.low %v1384_v10, %v1384_v10  ;;  %v1444_v37 = vmax.f32 %v1442_v55, %v1443_v22  ;;  %v1479_v38 = vunpack.i.l.bf16 %v1477_v28  ;;  %v1480_v39 = vunpack.i.h.bf16 %v1477_v28 }
 0x2d5   :  { %v1618_v40 = vunpack.c.l.b16 %v1820_v14  ;;  %v1653_v41 = vsel %vm1634_vm6, %v1617_v57, %v1652_v20  ;;  %v1416_v44 = vmax.f32 %v1414_v33, %v1415_v27  ;;  %v1860_v45 = vpack.c.bf16 %v984_v23, %v984_v23 }
 0x2d6   :  { %v1823_v47 = vcombine.low %v1397_v21, %v1397_v21  ;;  %v1433_v48 = vmax.f32 %v1431_v8, %v1432_v24  ;;  %v1481_v49 = vmax.f32 %v1479_v38, %v1480_v39  ;;  %v987_v7 = vmax.f32 %v953_v29, 0.0 }
 0x2d7   :  { %v1619_v34 = vunpack.c.l.b16 %v1821_v31  ;;  %v1407_v42 = vmax.f32 %v1405_v11, %v1406_v32  ;;  %v1417_v50 = vrot.slane %v1416_v44, 4  ;;  %v1451_v43 = vsel %vm1084_vm3, %v1860_v45, 4286644096 }
 0x2d8   :  { %v1445_v54 = vrot.slane %v1444_v37, 2  ;;  %v1482_v56 = vrot.slane %v1481_v49, 4  ;;  %v1453_v58 = vunpack.i.l.bf16 %v1451_v43  ;;  %v1454_v59 = vunpack.i.h.bf16 %v1451_v43 }
 0x2d9   :  { %v1620_v60 = vunpack.c.l.b16 %v1822_v36  ;;  %v1654_v57 = vsel %vm1636_vm7, %v1618_v40, %v1653_v41  ;;  %v1418_v62 = vmax.f32 %v1416_v44, %v1417_v50  ;;  %v1863_v63 = vpack.c.bf16 %v987_v7, %v987_v7 }
 0x2da   :  { %v1434_v25 = vrot.slane %v1433_v48, 1  ;;  %v1483_v61 = vmax.f32 %v1481_v49, %v1482_v56  ;;  %v1455_v0 = vmax.f32 %v1453_v58, %v1454_v59  ;;  %v945_v1 = vadd.f32 %v2340_v52, %v944_v51 }
 0x2db   :  { %v1621_v2 = vunpack.c.l.b16 %v1823_v47  ;;  %v1408_v3 = vrot.slane %v1407_v42, 1  ;;  %v1419_v4 = vrot.slane %v1418_v62, 2  ;;  %v1490_v5 = vsel %vm1084_vm3, %v1863_v63, 4286644096 }
 0x2dc   :  { %v1655_v8 = vsel %vm1638_vm8, %v1619_v34, %v1654_v57  ;;  %v1446_v6 = vmax.f32 %v1444_v37, %v1445_v54  ;;  %v1456_v9 = vrot.slane %v1455_v0, 4  ;;  %v1492_v10 = vunpack.i.l.bf16 %v1490_v5 }
 0x2dd   :  { %v1420_v11 = vmax.f32 %v1418_v62, %v1419_v4  ;;  %v1493_v55 = vunpack.i.h.bf16 %v1490_v5  ;;  %v985_v12 = vmax.f32 %v945_v1, 0.0  ;;  %v1641_v13 = vsel %vm1640_vm9, %v2378_v53, %v2402_v18 }
 0x2de   :  { %v1435_v14 = vmax.f32 %v1433_v48, %v1434_v25  ;;  %v1484_v15 = vrot.slane %v1483_v61, 2  ;;  %v1457_v52 = vmax.f32 %v1455_v0, %v1456_v9  ;;  %v1649_v16 = vsel %vm1640_vm9, %v2417_v30, %v2436_v46 }
 0x2df   :  { %v1409_v19 = vmax.f32 %v1407_v42, %v1408_v3  ;;  %v1421_v20 = vrot.slane %v1420_v11, 1  ;;  %v1494_v21 = vmax.f32 %v1492_v10, %v1493_v55  ;;  %v1861_v22 = vpack.c.bf16 %v985_v12, %v985_v12 }
 0x2e0   :  { %v1447_v23 = vrot.slane %v1446_v6, 1  ;;  %v1458_v24 = vrot.slane %v1457_v52, 2  ;;  %v1643_v26 = vsel %vm1642_vm10, %v2399_v17, %v1641_v13  ;;  %v1656_v28 = vsel %vm1640_vm9, %v1620_v60, %v1655_v8 }
 0x2e1   :  { %v1422_v29 = vmax.f32 %v1420_v11, %v1421_v20  ;;  %v1495_v53 = vrot.slane %v1494_v21, 4  ;;  %v1464_v18 = vsel %vm1084_vm3, %v1861_v22, 4286644096  ;;  %v1650_v31 = vsel %vm1642_vm10, %v2431_v35, %v1649_v16 }
 0x2e2   :  { %v1485_v32 = vmax.f32 %v1483_v61, %v1484_v15  ;;  %v1459_v30 = vmax.f32 %v1457_v52, %v1458_v24  ;;  %v1466_v46 = vunpack.i.l.bf16 %v1464_v18  ;;  %v1467_v33 = vunpack.i.h.bf16 %v1464_v18 }
 0x2e3   :  { %v1423_v27 = vpack.i.bf16 %v1422_v29, %v1422_v29  ;;  %v1496_v36 = vmax.f32 %v1494_v21, %v1495_v53  ;;  %v1657_v37 = vsel %vm1642_vm10, %v1621_v2, %v1656_v28  ;;  %v1665_v38 = vpack.c.b16 %v1643_v26, %v1643_v26 }
 0x2e4   :  { %v1410_v39 = vpack.i.bf16 %v1409_v19, %v1409_v19  ;;  %v1460_v17 = vrot.slane %v1459_v30, 1  ;;  %v1468_v40 = vmax.f32 %v1466_v46, %v1467_v33  ;;  %v1666_v41 = vpack.c.b16 %v1650_v31, %v1650_v31 }
 0x2e5   :  { %v1497_v44 = vrot.slane %v1496_v36, 2  ;;  %v1667_v45 = vpack.c.b16 %v1657_v37, %v1657_v37  ;;  %1673 = vst [vmem:[#allocation2] sm:$0xf] %v1665_v38  ;;  %v1448_v47 = vmax.f32 %v1446_v6, %v1447_v23  ;;  %v1825_v48 = vcombine.low %v1423_v27, %v1423_v27 }
 0x2e6   :  { %v1469_v49 = vrot.slane %v1468_v40, 4  ;;  %1674 = vst [vmem:[#allocation2 + $0x4] sm:$0xf] %v1666_v41  ;;  %v1436_v35 = vpack.i.bf16 %v1435_v14, %v1435_v14  ;;  %v1486_v7 = vrot.slane %v1485_v32, 1  ;;  %v1461_v34 = vmax.f32 %v1459_v30, %v1460_v17 }
 0x2e7   :  { %v1498_v42 = vmax.f32 %v1496_v36, %v1497_v44  ;;  %1675 = vst [vmem:[#allocation2 + $0x8] sm:$0xf] %v1667_v45  ;;  %v1824_v50 = vcombine.low %v1410_v39, %v1410_v39  ;;  %v1449_v54 = vpack.i.bf16 %v1448_v47, %v1448_v47  ;;  %v1623_v56 = vunpack.c.l.b16 %v1825_v48 }
 0x2e8   :  { %v1470_v43 = vmax.f32 %v1468_v40, %v1469_v49  ;;  %v1826_v59 = vcombine.low %v1436_v35, %v1436_v35  ;;  %v1487_v60 = vmax.f32 %v1485_v32, %v1486_v7  ;;  %v1462_v57 = vpack.i.bf16 %v1461_v34, %v1461_v34 }
 0x2e9   :  { %v1499_v51 = vrot.slane %v1498_v42, 1  ;;  %v1622_v62 = vunpack.c.l.b16 %v1824_v50  ;;  %v1827_v61 = vcombine.low %v1449_v54, %v1449_v54 }
 0x2ea   :  { %v1471_v58 = vrot.slane %v1470_v43, 2  ;;  %v1624_v2 = vunpack.c.l.b16 %v1826_v59  ;;  %v1488_v3 = vpack.i.bf16 %v1487_v60, %v1487_v60  ;;  %v1828_v4 = vcombine.low %v1462_v57, %v1462_v57 }
 0x2eb   :  { %v1500_v63 = vmax.f32 %v1498_v42, %v1499_v51  ;;  %v1658_v0 = vsel %vm1630_vm4, %v1623_v56, %v1622_v62  ;;  %v1625_v9 = vunpack.c.l.b16 %v1827_v61 }
 0x2ec   :  { %v1472_v25 = vmax.f32 %v1470_v43, %v1471_v58  ;;  %v1659_v6 = vsel %vm1632_vm5, %v1624_v2, %v1658_v0  ;;  %v1830_v11 = vcombine.low %v1488_v3, %v1488_v3  ;;  %v1626_v55 = vunpack.c.l.b16 %v1828_v4 }
 0x2ed   :  { %v1501_v5 = vpack.i.bf16 %v1500_v63, %v1500_v63  ;;  %v1660_v12 = vsel %vm1634_vm6, %v1625_v9, %v1659_v6 }
 0x2ee   :  { %v1473_v1 = vrot.slane %v1472_v25, 1  ;;  %v1628_v52 = vunpack.c.l.b16 %v1830_v11  ;;  %v1661_v16 = vsel %vm1636_vm7, %v1626_v55, %v1660_v12 }
 0x2ef   :  { %v1831_v13 = vcombine.low %v1501_v5, %v1501_v5 }
 0x2f0   :  { %v1474_v8 = vmax.f32 %v1472_v25, %v1473_v1 }
 0x2f1   :  { %v1629_v19 = vunpack.c.l.b16 %v1831_v13 }
 0x2f2   :  { %v1475_v10 = vpack.i.bf16 %v1474_v8, %v1474_v8 }
 0x2f4   :  { %v1829_v14 = vcombine.low %v1475_v10, %v1475_v10 }
 0x2f6   :  { %v1627_v15 = vunpack.c.l.b16 %v1829_v14 }
 0x2f8   :  { %v1662_v20 = vsel %vm1638_vm8, %v1627_v15, %v1661_v16 }
 0x2f9   :  { %v1663_v21 = vsel %vm1640_vm9, %v1628_v52, %v1662_v20 }
 0x2fa   :  { %v1664_v22 = vsel %vm1642_vm10, %v1629_v19, %v1663_v21 }
 0x2fb   :  { %v1668_v23 = vpack.c.b16 %v1664_v22, %v1664_v22 }
 0x2fd   :  { %1676 = vst [vmem:[#allocation2 + $0xc] sm:$0xf] %v1668_v23 }
 0x2fe   :  { %2077 = shalt.err (!%p2074_p4)
}
 0x2ff   :  { %s2089_s29 = smov 64   ;;  %s2090_s30 = smov 4  }
 0x300   :  { %1688 = dma.vmem_to_hbm [thread:$0]  %s1683_s27, 256, %s2483_s7, [#allocation3], %s2089_s29, %s2089_s29, %s2090_s30  }
 0x301   :  { %2086 = dma.done.wait [#allocation3], 256  }
 0x302   :  { %2087 = vsyncadd [#allocation3], 4294967040 }
 0x303   :  { %1692 = vsyncpa [#allocation3], 1 }

</bundles_post_ra>
